<compile_context>
chip_gen: v7x
topology: tpu7x:2x2x1
jax: 0.10.0
libtpu: 0.0.40
codegen_flags: <defaults>
</compile_context>

<pallas_src>
import jax
import jax.numpy as jnp
import numpy as np
from jax.experimental import pallas as pl
from jax.experimental.pallas import tpu as pltpu

_LANE = 128
_SUBLANE = 8


def _round_up(x, m):
    return ((x + m - 1) // m) * m


def _composer_kernel(mem_dim_padded):
    Mp = mem_dim_padded

    def kernel(z_ref, lc_ref, rc_ref, w_ref, b_ref, c_ref, h_ref):
        # Single fused MXU pass: [TB, K] @ [K, 5*Mp], K = in_dim + 2*mem_dim.
        z = z_ref[...]
        g = jnp.dot(z.astype(w_ref.dtype), w_ref[...],
                    preferred_element_type=jnp.float32) + b_ref[...]

        # Lane-aligned gate slices (Mp is a multiple of 128); gate order (i, lf, rf, o, u).
        i_gate = jax.nn.sigmoid(g[:, 0 * Mp:1 * Mp])
        lf_gate = jax.nn.sigmoid(g[:, 1 * Mp:2 * Mp])
        rf_gate = jax.nn.sigmoid(g[:, 2 * Mp:3 * Mp])
        o_gate = jax.nn.sigmoid(g[:, 3 * Mp:4 * Mp])
        update = jnp.tanh(g[:, 4 * Mp:5 * Mp])

        c = i_gate * update + lf_gate * lc_ref[...] + rf_gate * rc_ref[...]
        c_ref[...] = c.astype(c_ref.dtype)
        h_ref[...] = (o_gate * jnp.tanh(c)).astype(h_ref.dtype)

    return kernel


def init_params(key, in_dim, mem_dim):
    """Deterministic synthetic parameters (torch.nn.Linear-shaped, stored transposed).

    Gate stacking order along the 5*mem_dim axis: (i, lf, rf, o, u).
    """
    ks = jax.random.split(key, 5)
    scale = 0.1
    w_in = scale * jax.random.normal(ks[0], (in_dim, mem_dim), jnp.float32)
    b_in = scale * jax.random.normal(ks[1], (1, mem_dim), jnp.float32)
    w_lh = scale * jax.random.normal(ks[2], (mem_dim, 5 * mem_dim), jnp.float32)
    w_rh = scale * jax.random.normal(ks[3], (mem_dim, 5 * mem_dim), jnp.float32)
    # sum of the two per-gate biases (lh-linear bias + rh-linear bias), stacked.
    b_g = scale * jax.random.normal(ks[4], (1, 5 * mem_dim), jnp.float32)
    return {"w_in": w_in, "b_in": b_in, "w_lh": w_lh, "w_rh": w_rh, "b_g": b_g}


def fuse_params(params, in_dim, mem_dim, *, dtype=jnp.float32):
    """Build the single fused, lane-padded weight/bias the kernel consumes.

    W rows: [0:in_dim] = w_in replicated into every gate block,
            [in_dim:in_dim+M] = w_lh, [in_dim+M:] = w_rh.
    Each gate block occupies a lane-aligned Mp = round_up(M, 128) slab of columns;
    bias = tile(b_in, 5) + b_g, folded.  `dtype` may be bf16 to halve weight DMA.
    """
    M = mem_dim
    Mp = _round_up(M, _LANE)
    K = in_dim + 2 * M
    w_in, b_in = params["w_in"], params["b_in"]
    w_lh, w_rh, b_g = params["w_lh"], params["w_rh"], params["b_g"]

    W = jnp.zeros((K, 5 * Mp), jnp.float32)
    b = jnp.zeros((1, 5 * Mp), jnp.float32)
    for k in range(5):
        c0 = k * Mp
        W = W.at[:in_dim, c0:c0 + M].set(w_in)
        W = W.at[in_dim:in_dim + M, c0:c0 + M].set(w_lh[:, k * M:(k + 1) * M])
        W = W.at[in_dim + M:, c0:c0 + M].set(w_rh[:, k * M:(k + 1) * M])
        b = b.at[:, c0:c0 + M].set(b_in + b_g[:, k * M:(k + 1) * M])
    return {"w": W.astype(dtype), "b": b, "mem_dim_padded": Mp}


def binary_tree_composer(fused, x, lc, lh, rc, rh, *, block_b=128):
    """Pallas forward pass over a batch of tree nodes. Returns (c, h), each [B, mem_dim]."""
    B, in_dim = x.shape
    M = lc.shape[1]
    Mp = fused["mem_dim_padded"]
    W, bias = fused["w"], fused["b"]
    K = W.shape[0]
    assert K == in_dim + 2 * M

    TB = min(block_b, _round_up(B, _SUBLANE))
    Bp = _round_up(B, TB)
    pad_b = Bp - B
    pad_m = Mp - M

    # One concatenated activation slab (single input DMA per block) + lane-padded cells.
    z = jnp.pad(jnp.concatenate([x, lh, rh], axis=1), ((0, pad_b), (0, 0)))
    lc_p = jnp.pad(lc, ((0, pad_b), (0, pad_m)))
    rc_p = jnp.pad(rc, ((0, pad_b), (0, pad_m)))

    grid = (Bp // TB,)

    c_p, h_p = pl.pallas_call(
        _composer_kernel(Mp),
        out_shape=(jax.ShapeDtypeStruct((Bp, Mp), jnp.float32),
                   jax.ShapeDtypeStruct((Bp, Mp), jnp.float32)),
        grid_spec=pltpu.PrefetchScalarGridSpec(
            num_scalar_prefetch=0,
            grid=grid,
            in_specs=[
                pl.BlockSpec((TB, K), lambda i: (i, 0)),        # z  = [x | lh | rh]
                pl.BlockSpec((TB, Mp), lambda i: (i, 0)),       # lc (lane-padded)
                pl.BlockSpec((TB, Mp), lambda i: (i, 0)),       # rc (lane-padded)
                pl.BlockSpec((K, 5 * Mp), lambda i: (0, 0)),    # fused weights, VMEM-resident
                pl.BlockSpec((1, 5 * Mp), lambda i: (0, 0)),    # fused bias, VMEM-resident
            ],
            out_specs=(pl.BlockSpec((TB, Mp), lambda i: (i, 0)),
                       pl.BlockSpec((TB, Mp), lambda i: (i, 0))),
        ),
        compiler_params=pltpu.CompilerParams(
            dimension_semantics=("parallel",)),
    )(z, lc_p, rc_p, W, bias)

    return c_p[:B, :M], h_p[:B, :M]


def reference(params, x, lc, lh, rc, rh):
    """Plain-JAX reference mirroring the PyTorch forward."""
    M = lc.shape[1]
    x_in = x @ params["w_in"] + params["b_in"]
    g = lh @ params["w_lh"] + rh @ params["w_rh"] + params["b_g"]
    i = jax.nn.sigmoid(x_in + g[:, 0 * M:1 * M])
    lf = jax.nn.sigmoid(x_in + g[:, 1 * M:2 * M])
    rf = jax.nn.sigmoid(x_in + g[:, 2 * M:3 * M])
    o = jax.nn.sigmoid(x_in + g[:, 3 * M:4 * M])
    u = jnp.tanh(x_in + g[:, 4 * M:5 * M])
    c = i * u + lf * lc + rf * rc
    h = o * jnp.tanh(c)
    return c, h


if __name__ == "__main__":
    # B = number of tree nodes composed in one call (a whole tree level batched together).
    B, in_dim, mem_dim = 256, 16, 32

    key = jax.random.PRNGKey(0)
    kp, kx, klc, klh, krc, krh = jax.random.split(key, 6)

    params = init_params(kp, in_dim, mem_dim)
    fused = fuse_params(params, in_dim, mem_dim)   # dtype=jnp.bfloat16 halves weight DMA

    x = jax.random.normal(kx, (B, in_dim), jnp.float32)
    lc = jax.random.normal(klc, (B, mem_dim), jnp.float32)
    lh = jax.random.normal(klh, (B, mem_dim), jnp.float32)
    rc = jax.random.normal(krc, (B, mem_dim), jnp.float32)
    rh = jax.random.normal(krh, (B, mem_dim), jnp.float32)

    c, h = binary_tree_composer(fused, x, lc, lh, rc, rh)
    jax.block_until_ready((c, h))

    c_ref, h_ref = reference(params, x, lc, lh, rc, rh)
    np.testing.assert_allclose(np.asarray(c), np.asarray(c_ref), rtol=1e-5, atol=2e-5)
    np.testing.assert_allclose(np.asarray(h), np.asarray(h_ref), rtol=1e-5, atol=2e-5)

    print("KERNEL_OK")
</pallas_src>

<mosaic_0001>
module attributes {stable_mosaic.version = 11 : i64} {
  func.func @kernel(%arg0: i32, %arg1: memref<128x80xf32, #tpu.memory_space<vmem>>, %arg2: memref<128x128xf32, #tpu.memory_space<vmem>>, %arg3: memref<128x128xf32, #tpu.memory_space<vmem>>, %arg4: memref<80x640xf32, #tpu.memory_space<vmem>>, %arg5: memref<1x640xf32, #tpu.memory_space<vmem>>, %arg6: memref<128x128xf32, #tpu.memory_space<vmem>>, %arg7: memref<128x128xf32, #tpu.memory_space<vmem>>) attributes {dimension_semantics = [#tpu.dimension_semantics<parallel>], iteration_bounds = array<i64: 2>, scalar_prefetch = 0 : i64, scratch_operands = 0 : i64, tpu.core_type = #tpu.core_type<tc>, window_params = [{transform_indices = @transform_0, window_bounds = array<i64: 128, 80>}, {transform_indices = @transform_1, window_bounds = array<i64: 128, 128>}, {transform_indices = @transform_2, window_bounds = array<i64: 128, 128>}, {pipeline_mode = #tpu.pipeline_mode<synchronous>, transform_indices = @transform_3, window_bounds = array<i64: 80, 640>}, {pipeline_mode = #tpu.pipeline_mode<synchronous>, transform_indices = @transform_4, window_bounds = array<i64: 1, 640>}, {transform_indices = @transform_5, window_bounds = array<i64: 128, 128>}, {transform_indices = @transform_6, window_bounds = array<i64: 128, 128>}]} {
    %c0 = arith.constant 0 : index
    %c0_0 = arith.constant 0 : index
    %0 = vector.load %arg1[%c0, %c0_0] : memref<128x80xf32, #tpu.memory_space<vmem>>, vector<128x80xf32>
    %c0_1 = arith.constant 0 : index
    %c0_2 = arith.constant 0 : index
    %1 = vector.load %arg4[%c0_1, %c0_2] : memref<80x640xf32, #tpu.memory_space<vmem>>, vector<80x640xf32>
    %cst = arith.constant dense<0.000000e+00> : vector<128x640xf32>
    %2 = tpu.matmul %0, %1, %cst {dimension_numbers = #tpu.dot_dimension_numbers<[1], [0], [0], [1], [0, 0, 1, 1], [], []>} : vector<128x80xf32>, vector<80x640xf32>, vector<128x640xf32> -> vector<128x640xf32>
    %c0_3 = arith.constant 0 : index
    %c0_4 = arith.constant 0 : index
    %3 = vector.load %arg5[%c0_3, %c0_4] : memref<1x640xf32, #tpu.memory_space<vmem>>, vector<1x640xf32>
    %4 = vector.broadcast %3 : vector<1x640xf32> to vector<128x640xf32>
    %5 = arith.addf %2, %4 : vector<128x640xf32>
    %6 = vector.extract_strided_slice %5 {offsets = [0, 0], sizes = [128, 128], strides = [1, 1]} : vector<128x640xf32> to vector<128x128xf32>
    %7 = arith.negf %6 : vector<128x128xf32>
    %8 = math.exp %7 : vector<128x128xf32>
    %cst_5 = arith.constant 1.000000e+00 : f32
    %9 = vector.broadcast %cst_5 : f32 to vector<128x128xf32>
    %10 = arith.addf %9, %8 : vector<128x128xf32>
    %11 = arith.divf %9, %10 : vector<128x128xf32>
    %12 = vector.extract_strided_slice %5 {offsets = [0, 128], sizes = [128, 128], strides = [1, 1]} : vector<128x640xf32> to vector<128x128xf32>
    %13 = arith.negf %12 : vector<128x128xf32>
    %14 = math.exp %13 : vector<128x128xf32>
    %cst_6 = arith.constant 1.000000e+00 : f32
    %15 = vector.broadcast %cst_6 : f32 to vector<128x128xf32>
    %16 = arith.addf %15, %14 : vector<128x128xf32>
    %17 = arith.divf %15, %16 : vector<128x128xf32>
    %18 = vector.extract_strided_slice %5 {offsets = [0, 256], sizes = [128, 128], strides = [1, 1]} : vector<128x640xf32> to vector<128x128xf32>
    %19 = arith.negf %18 : vector<128x128xf32>
    %20 = math.exp %19 : vector<128x128xf32>
    %cst_7 = arith.constant 1.000000e+00 : f32
    %21 = vector.broadcast %cst_7 : f32 to vector<128x128xf32>
    %22 = arith.addf %21, %20 : vector<128x128xf32>
    %23 = arith.divf %21, %22 : vector<128x128xf32>
    %24 = vector.extract_strided_slice %5 {offsets = [0, 384], sizes = [128, 128], strides = [1, 1]} : vector<128x640xf32> to vector<128x128xf32>
    %25 = arith.negf %24 : vector<128x128xf32>
    %26 = math.exp %25 : vector<128x128xf32>
    %cst_8 = arith.constant 1.000000e+00 : f32
    %27 = vector.broadcast %cst_8 : f32 to vector<128x128xf32>
    %28 = arith.addf %27, %26 : vector<128x128xf32>
    %29 = arith.divf %27, %28 : vector<128x128xf32>
    %30 = vector.extract_strided_slice %5 {offsets = [0, 512], sizes = [128, 128], strides = [1, 1]} : vector<128x640xf32> to vector<128x128xf32>
    %31 = math.tanh %30 : vector<128x128xf32>
    %32 = arith.mulf %11, %31 : vector<128x128xf32>
    %c0_9 = arith.constant 0 : index
    %c0_10 = arith.constant 0 : index
    %33 = vector.load %arg2[%c0_9, %c0_10] : memref<128x128xf32, #tpu.memory_space<vmem>>, vector<128x128xf32>
    %34 = arith.mulf %17, %33 : vector<128x128xf32>
    %35 = arith.addf %32, %34 : vector<128x128xf32>
    %c0_11 = arith.constant 0 : index
    %c0_12 = arith.constant 0 : index
    %36 = vector.load %arg3[%c0_11, %c0_12] : memref<128x128xf32, #tpu.memory_space<vmem>>, vector<128x128xf32>
    %37 = arith.mulf %23, %36 : vector<128x128xf32>
    %38 = arith.addf %35, %37 : vector<128x128xf32>
    %c0_13 = arith.constant 0 : index
    %c0_14 = arith.constant 0 : index
    %39 = vector.load %arg6[%c0_13, %c0_14] : memref<128x128xf32, #tpu.memory_space<vmem>>, vector<128x128xf32>
    tpu.vector_store %arg6[%c0_13, %c0_14], %38 {strides = array<i32>} : memref<128x128xf32, #tpu.memory_space<vmem>>, vector<128x128xf32>,
    %40 = math.tanh %38 : vector<128x128xf32>
    %41 = arith.mulf %29, %40 : vector<128x128xf32>
    %c0_15 = arith.constant 0 : index
    %c0_16 = arith.constant 0 : index
    %42 = vector.load %arg7[%c0_15, %c0_16] : memref<128x128xf32, #tpu.memory_space<vmem>>, vector<128x128xf32>
    tpu.vector_store %arg7[%c0_15, %c0_16], %41 {strides = array<i32>} : memref<128x128xf32, #tpu.memory_space<vmem>>, vector<128x128xf32>,
    return
  }
  func.func @transform_0(%arg0: i32) -> (i32, i32) {
    %c0_i32 = arith.constant 0 : i32
    %c0_i32_0 = arith.constant 0 : i32
    return %arg0, %c0_i32 : i32, i32
  }
  func.func @transform_1(%arg0: i32) -> (i32, i32) {
    %c0_i32 = arith.constant 0 : i32
    %c0_i32_0 = arith.constant 0 : i32
    return %arg0, %c0_i32 : i32, i32
  }
  func.func @transform_2(%arg0: i32) -> (i32, i32) {
    %c0_i32 = arith.constant 0 : i32
    %c0_i32_0 = arith.constant 0 : i32
    return %arg0, %c0_i32 : i32, i32
  }
  func.func @transform_3(%arg0: i32) -> (i32, i32) {
    %c0_i32 = arith.constant 0 : i32
    %c0_i32_0 = arith.constant 0 : i32
    %c0_i32_1 = arith.constant 0 : i32
    return %c0_i32, %c0_i32_0 : i32, i32
  }
  func.func @transform_4(%arg0: i32) -> (i32, i32) {
    %c0_i32 = arith.constant 0 : i32
    %c0_i32_0 = arith.constant 0 : i32
    %c0_i32_1 = arith.constant 0 : i32
    return %c0_i32, %c0_i32_0 : i32, i32
  }
  func.func @transform_5(%arg0: i32) -> (i32, i32) {
    %c0_i32 = arith.constant 0 : i32
    %c0_i32_0 = arith.constant 0 : i32
    return %arg0, %c0_i32 : i32, i32
  }
  func.func @transform_6(%arg0: i32) -> (i32, i32) {
    %c0_i32 = arith.constant 0 : i32
    %c0_i32_0 = arith.constant 0 : i32
    return %arg0, %c0_i32 : i32, i32
  }
}

</mosaic_0001>

<bundles_post_ra>
// kernel: tpu_custom_call.1
= control target key start
LH: loop header
LB: loop body
LE: loop exit
PB: predicated region body
PF: predicated region fallthrough
CT: control target
= control target key end

     0   :  { %s3730_s0 = inlined_call_operand.vmem [shape: f32[256,80], index: 0, kind: input, shape index: {}]   ;;  %s3731_s1 = inlined_call_operand.hbm [shape: f32[256,128], index: 1, kind: input, shape index: {}]   ;;  %s3732_s2 = inlined_call_operand.hbm [shape: f32[256,128], index: 2, kind: input, shape index: {}]   ;;  %s3733_s3 = inlined_call_operand.vmem [shape: f32[80,640], index: 3, kind: input, shape index: {}]   ;;  %s3734_s4 = inlined_call_operand.vmem [shape: f32[1,640], index: 4, kind: input, shape index: {}]   ;;  %s3735_s5 = inlined_call_operand.hbm [shape: f32[256,128], index: 5, kind: output, shape index: {0}]   ;;  %s3736_s6 = inlined_call_operand.hbm [shape: f32[256,128], index: 6, kind: output, shape index: {1}]  }
   0x1   :  { %3740 = sst [smem:[#allocation44_spill]] %s3731_s1 }
   0x2   :  { %12 = vsyncpa [#allocation3], 0 }
   0x3   :  { %14 = vsyncpa [#allocation3 + $0x1], 0 }
   0x4   :  { %15 = vsyncpa [#allocation6], 0 }
   0x5   :  { %17 = vsyncpa [#allocation6 + $0x1], 0 }
   0x6   :  { %18 = vsyncpa [#allocation4], 0 }
   0x7   :  { %20 = vsyncpa [#allocation4 + $0x1], 0 }
   0x8   :  { %21 = vsyncpa [#allocation9], 0 }
   0x9   :  { %23 = vsyncpa [#allocation9 + $0x1], 0  ;;  %s2576_s21 = smov 0   ;;  %s2578_s22 = smov 0  }
   0xa   :  { %s2580_s23 = smov 0   ;;  %s2582_s24 = smov 0  }
   0xb LB: > { %s2597_s25 = sadd.s32 4294967295, %s2530_s24   ;;  %s1707_s26 = sadd.s32 4294967294, %s2530_s24   ;;  %s2530_s24 = sphi %s2582_s24, %s3821_s24   ;;  %s2526_s23 = sphi %s2580_s23, %s3820_s23   ;;  %s2522_s22 = sphi %s2578_s22, %s3819_s22   ;;  %s2518_s21 = sphi %s2576_s21, %s3818_s21  }
   0xc   : > { %s2601_s27 = sadd.s32 1, %s2530_s24   ;;  %s62_s28 = sadd.s32 1, %s2526_s23 }
   0xd   : > { %s59_s29 = ssub.s32 %s2530_s24, %s2601_s27  ;;  %p69_p0 = scmp.ne.s32.totalorder %s2526_s23, %s2522_s22 }
   0xe   : > { %p60_p1 = scmp.eq.s32.totalorder %s59_s29, 0  ;;  %p70_p2 = scmp.eq.s32.totalorder %s2530_s24, 0 }
   0xf   : > { %p75_p3 = scmp.ne.s32.totalorder %s2522_s22, %s2518_s21  ;;  %p76_p4 = scmp.eq.s32.totalorder %s2597_s25, 0 }
  0x10   : > { %s2613_s30 = scalar_select %p60_p1, %s2526_s23, %s62_s28  }
  0x11   : > { %p2615_p5 = por %p70_p2, %p69_p0  ;;  %p2619_p6 = por %p76_p4, %p75_p3 }
  0x12   : > { %p167_p7 = scmp.eq.s32.totalorder %s2597_s25, 1  ;;  %p173_p8 = scmp.eq.s32.totalorder %s1707_s26, 1 }
  0x13   : > { %s3742_s8 = scalar_select %p2619_p6, 1, 0 }
  0x14   : > { %p2009_p10 = scmp.lt.s32.totalorder %s2530_s24, 2  ;;  %p2626_p11 = por %p167_p7, %p69_p0 }
  0x15   : > { %p2630_p12 = por %p173_p8, %p75_p3  ;;  %s2635_s11 = sand.u32 1, %s2526_s23  }
  0x16   : > { %s3743_s9 = scalar_select %p2626_p11, 1, 0 }
  0x17   : > { %s3744_s10 = scalar_select %p2630_p12, 1, 0 }
  0x18   : > { %s1843_s12 = sshll.u32 %s2530_s24, 11  ;;  %s1710_s13 = sshll.u32 %s2635_s11, 7 }
  0x19   : > { %s3745_s1 = sld [smem:[#allocation44_spill]]  ;;  %s238_s17 = scalar_lea.vmem [#allocation2], %s1710_s13 }
  0x1a   : > { %s245_s18 = sshll.u32 %s238_s17, 4  ;;  %p2650_p13 = pnand %p2009_p10, %p2615_p5  ;;  %s2654_s18 = int_to_ptr.vmem [resolvable:$true] %s245_s18 }
  0x1b   : > { %s235_s20 = scalar_lea.sflag [#allocation3], %s2635_s11 }
  0x1c   : > { %p2370_p1 = pneg %p2650_p13 }
  0x1f   : > { %s2644_s16 = scalar_lea.hbm %s3745_s1, %s1843_s12  ;;  %s2373_s7 = scalar_lea.hbm %s3745_s1, 4096 }
  0x20   : > { %s2368_s26 = scalar_lea.hbm %s2644_s16, 2048  ;;  %p2374_p4 = scmp.lt.u32.totalorder %s2644_s16, %s3745_s1 }
  0x21   : > { %p2369_p0 = scmp.ne.s32.totalorder %s2644_s16, %s2368_s26  ;;  %p2375_p5 = scmp.lt.u32.totalorder %s2373_s7, %s2368_s26 }
  0x22   : > { %p2377_p8 = scmp.lt.u32.totalorder %s2368_s26, %s2644_s16 }
  0x23   : > { %p2371_p2 = pnand %p2370_p1, %p2369_p0  ;;  %p2376_p7 = por %p2375_p5, %p2374_p4 }
  0x25   : > { %p2372_p3 = pneg %p2371_p2  ;;  %p2378_p10 = por %p2377_p8, %p2376_p7 }
  0x27   : > { %p2379_p9 = pnand %p2378_p10, %p2372_p3 }
  0x29   : > { %2382 = shalt.err (!%p2379_p9)
}
  0x2a   : > { %s2383_s17 = scalar_lea.vmem %s2654_s18, 2048  ;;  %s2532_s28 = smov [#allocation2]  }
  0x2b   : > { %p2384_p0 = scmp.ne.s32.totalorder %s2654_s18, %s2383_s17  ;;  %s2388_s29 = sshll.u32 %s2532_s28, 4  ;;  %s2389_s29 = int_to_ptr.vmem [resolvable:$false] %s2388_s29 }
  0x2c   : > { %s2390_s14 = scalar_lea.vmem %s2389_s29, 4096  ;;  %p2391_p11 = scmp.lt.s32.totalorder %s2654_s18, %s2389_s29 }
  0x2d   : > { %p2386_p2 = pnand %p2384_p0, %p2370_p1  ;;  %p2392_p4 = scmp.lt.s32.totalorder %s2390_s14, %s2383_s17 }
  0x2f   : > { %p2387_p12 = pneg %p2386_p2  ;;  %p2393_p5 = por %p2392_p4, %p2391_p11 }
  0x31   : > { %p2394_p7 = pnand %p2393_p5, %p2387_p12 }
  0x33   : > { %2397 = shalt.err (!%p2394_p7)
}
  0x34   : > { %s3738_s26 = smov 128   ;;  %s2534_s7 = smov 8  }
  0x35   : > { %1998 = dma.hbm_to_vmem [thread:$0]  (!%p2650_p13), %s2644_s16, 2048, %s2654_s18, %s235_s20, %s3738_s26, %s3738_s26, %s2534_s7  }
  0x36   : > { %p1716_p9 = scmp.ge.s32.totalorder %s2530_s24, 1  ;;  %p274_p11 = scmp.lt.s32.totalorder %s2530_s24, 3 }
  0x37   : > { %s2698_s29 = scalar_lea.hbm %s3732_s2, %s1843_s12  ;;  %s259_s14 = scalar_lea.vmem [#allocation5], %s1710_s13 }
  0x38   : > { %p2689_p12 = pnand %p1716_p9, %p274_p11  ;;  %s266_s1 = sshll.u32 %s259_s14, 4  ;;  %s2702_s1 = int_to_ptr.vmem [resolvable:$true] %s266_s1 }
  0x39   : > { %s256_s16 = scalar_lea.sflag [#allocation6], %s2635_s11  ;;  %s2398_s18 = scalar_lea.hbm %s2698_s29, 2048 }
  0x3a   : > { %p2399_p3 = scmp.ne.s32.totalorder %s2698_s29, %s2398_s18  ;;  %s2403_s12 = scalar_lea.hbm %s3732_s2, 4096 }
  0x3b   : > { %p2404_p0 = scmp.lt.u32.totalorder %s2698_s29, %s3732_s2  ;;  %p2405_p2 = scmp.lt.u32.totalorder %s2403_s12, %s2398_s18 }
  0x3c   : > { %p2401_p8 = pnand %p2399_p3, %p2370_p1  ;;  %p2407_p5 = scmp.lt.u32.totalorder %s2398_s18, %s2698_s29 }
  0x3d   : > { %p2406_p4 = por %p2405_p2, %p2404_p0 }
  0x3e   : > { %p2402_p10 = pneg %p2401_p8 }
  0x3f   : > { %p2408_p7 = por %p2407_p5, %p2406_p4 }
  0x41   : > { %p2409_p9 = pnand %p2408_p7, %p2402_p10 }
  0x43   : > { %2412 = shalt.err (!%p2409_p9)
}
  0x44   : > { %s2413_s13 = scalar_lea.vmem %s2702_s1, 2048  ;;  %s2535_s14 = smov [#allocation5]  }
  0x45   : > { %p2414_p11 = scmp.ne.s32.totalorder %s2702_s1, %s2413_s13  ;;  %s2418_s20 = sshll.u32 %s2535_s14, 4  ;;  %s2419_s20 = int_to_ptr.vmem [resolvable:$false] %s2418_s20 }
  0x46   : > { %s2420_s26 = scalar_lea.vmem %s2419_s20, 4096  ;;  %p2421_p6 = scmp.lt.s32.totalorder %s2702_s1, %s2419_s20 }
  0x47   : > { %p2416_p3 = pnand %p2414_p11, %p2370_p1  ;;  %p2422_p0 = scmp.lt.s32.totalorder %s2420_s26, %s2413_s13 }
  0x49   : > { %p2417_p8 = pneg %p2416_p3  ;;  %p2423_p2 = por %p2422_p0, %p2421_p6 }
  0x4b   : > { %p2424_p4 = pnand %p2423_p2, %p2417_p8 }
  0x4d   : > { %2427 = shalt.err (!%p2424_p4)
}
  0x4e   : > { %s3748_s18 = smov 128   ;;  %278 = sbr.rel (%p2689_p12) target bundleno = 532 (0x214), region = 40 }
  0x4f   : > { %2001 = dma.hbm_to_vmem [thread:$0]  (!%p2650_p13), %s2698_s29, 2048, %s2702_s1, %s256_s16, %s3748_s18, %s3748_s18, %s2534_s7  }
  0x55   : > { %s2736_s17 = sand.u32 1, %s2522_s22   ;;  %p3749_p6 = scmp.ne.s32.totalorder %s3742_s8, 0 }
  0x56   : > { %s2739_s12 = sshll.u32 %s2736_s17, 7  ;;  %s281_s19 = scalar_lea.sflag [#allocation3], %s2736_s17 }
  0x57   : > { %s2743_s28 = scalar_lea.vmem [#allocation2], %s2739_s12 }
  0x58   : > { %2501 = dma.done.wait (%p3749_p6), %s281_s19, 2048  }
  0x59   : > { %2503 = vsyncadd (%p3749_p6), %s281_s19, 4294965248  ;;  %s290_s1 = scalar_lea.sflag [#allocation6], %s2736_s17  ;;  %s2751_s11 = scalar_lea.vmem [#allocation5], %s2739_s12 }
  0x5a   : > { %2505 = dma.done.wait (%p3749_p6), %s290_s1, 2048  }
  0x5b   : > { %2507 = vsyncadd (%p3749_p6), %s290_s1, 4294965248  ;;  %v2536_v0 = vmov 0.0   ;;  %v364_v1 = vld [vmem:[%s3733_s3 + $0x8] sm:$0xff]  ;;  %v369_v2 = vld [vmem:[%s3733_s3 + $0x30] sm:$0xff]  ;;  %s1721_s7 = sshll.u32 %s2597_s25, 4  ;;  %vm440_vm0 = vcmask 654336  }
  0x5c   : > { %553 = vmatprep.mubr.f32.mxu0 %v2536_v0  ;;  %714 = vmatprep.mubr.f32.mxu1 %v2536_v0  ;;  %v366_v3 = vld [vmem:[%s3733_s3 + $0x18] sm:$0xff]  ;;  %v1917_v4 = vpack.c.bf16 %v369_v2, %v364_v1  ;;  %v371_v5 = vld [vmem:[%s3733_s3 + $0x40] sm:$0xff]  ;;  %v368_v7 = vld [vmem:[%s3733_s3 + $0x28] sm:$0xff]  ;;  %p2825_p13 = scmp.lt.s32.totalorder %s1721_s7, 31  ;;  %s3461_s20 = scalar_lea.vmem [#allocation7], %s2739_s12 }
  0x5d   : > { %v363_v6 = vld [vmem:[%s3733_s3] sm:$0xff]  ;;  %v1937_v8 = vpack.c.bf16 %v371_v5, %v366_v3  ;;  %v365_v10 = vld [vmem:[%s3733_s3 + $0x10] sm:$0xff]  ;;  %v370_v11 = vld [vmem:[%s3733_s3 + $0x38] sm:$0xff]  ;;  %s3558_s26 = scalar_lea.vmem [#allocation8], %s2739_s12  ;;  %s1845_s12 = sshll.u32 %s2597_s25, 11 }
  0x5e   : > { %v1919_v9 = vpack.c.bf16 %v368_v7, %v363_v6  ;;  %v374_v12 = vld [vmem:[%s3733_s3 + $0x58] sm:$0xff]  ;;  %1918 = vmatprep.subr.bf16.mxu0 %v1917_v4  ;;  %v1939_v13 = vpack.c.bf16 %v370_v11, %v365_v10  ;;  %v379_v14 = vld [vmem:[%s3733_s3 + $0x80] sm:$0xff]  ;;  %v376_v15 = vld [vmem:[%s3733_s3 + $0x68] sm:$0xff]  ;;  %s3823_s7 = smov (!%p2825_p13, %s1721_s7), 31  ;;  %s3613_s19 = scalar_lea.hbm %s3735_s5, %s1845_s12 }
  0x5f   : > { %v381_v16 = vld [vmem:[%s3733_s3 + $0x90] sm:$0xff]  ;;  %1938 = vmatprep.subr.bf16.mxu1 %v1937_v8  ;;  %v1921_v17 = vpack.c.bf16 %v379_v14, %v374_v12  ;;  %v378_v20 = vld [vmem:[%s3733_s3 + $0x78] sm:$0xff]  ;;  %v375_v21 = vld [vmem:[%s3733_s3 + $0x60] sm:$0xff]  ;;  %s1722_s14 = sshll.u32 %s3823_s7, 3  ;;  %s1533_s1 = scalar_lea.sflag [#allocation4], %s2736_s17 }
  0x60   : > { %1920 = vmatpush1.bf16.msra.mxu0 %v1919_v9  ;;  %v1941_v18 = vpack.c.bf16 %v381_v16, %v376_v15  ;;  %v373_v19 = vld [vmem:[%s3733_s3 + $0x50] sm:$0xff]  ;;  %1940 = vmatpush1.bf16.msra.mxu1 %v1939_v13  ;;  %v380_v23 = vld [vmem:[%s3733_s3 + $0x88] sm:$0xff]  ;;  %v386_v28 = vld [vmem:[%s3733_s3 + $0xb8] sm:$0xff]  ;;  %s2899_s15 = scalar_lea.vmem %s3730_s0, %s1722_s14  ;;  %p3806_p12 = scmp.ne.s32.totalorder %s3743_s9, 0 }
  0x61   : > { %v1923_v22 = vpack.c.bf16 %v378_v20, %v373_v19  ;;  %v384_v24 = vld [vmem:[%s3733_s3 + $0xa8] sm:$0xff]  ;;  %v389_v25 = vld [vmem:[%s3733_s3 + $0xd0] sm:$0xff]  ;;  %1922 = vmatprep.subr.bf16.mxu0 %v1921_v17  ;;  %v1943_v26 = vpack.c.bf16 %v380_v23, %v375_v21  ;;  %v391_v29 = vld [vmem:[%s3733_s3 + $0xe0] sm:$0xff]  ;;  %s2537_s29 = smov [#allocation7]  }
  0x62   : > { %1942 = vmatprep.subr.bf16.mxu1 %v1941_v18  ;;  %v1925_v27 = vpack.c.bf16 %v389_v25, %v384_v24  ;;  %v383_v30 = vld [vmem:[%s3733_s3 + $0xa0] sm:$0xff]  ;;  %v1945_v31 = vpack.c.bf16 %v391_v29, %v386_v28  ;;  %v388_v32 = vld [vmem:[%s3733_s3 + $0xc8] sm:$0xff]  ;;  %v385_v33 = vld [vmem:[%s3733_s3 + $0xb0] sm:$0xff]  ;;  %s2432_s16 = sshll.u32 %s2537_s29, 4  ;;  %s2433_s16 = int_to_ptr.vmem [resolvable:$false] %s2432_s16 }
  0x63   : > { %v390_v34 = vld [vmem:[%s3733_s3 + $0xd8] sm:$0xff]  ;;  %v1927_v35 = vpack.c.bf16 %v388_v32, %v383_v30  ;;  %v399_v37 = vld [vmem:[%s3733_s3 + $0x120] sm:$0xff]  ;;  %v396_v38 = vld [vmem:[%s3733_s3 + $0x108] sm:$0xff]  ;;  %s2434_s13 = scalar_lea.vmem %s2433_s16, 4096 }
  0x64   : > { %1924 = vmatpush1.bf16.msra.mxu0 %v1923_v22  ;;  %v394_v36 = vld [vmem:[%s3733_s3 + $0xf8] sm:$0xff]  ;;  %1944 = vmatpush1.bf16.msra.mxu1 %v1943_v26  ;;  %v1947_v39 = vpack.c.bf16 %v390_v34, %v385_v33  ;;  %v401_v41 = vld [vmem:[%s3733_s3 + $0x130] sm:$0xff]  ;;  %v395_v45 = vld [vmem:[%s3733_s3 + $0x100] sm:$0xff] }
  0x65   : > { %1926 = vmatprep.subr.bf16.mxu0 %v1925_v27  ;;  %v1929_v40 = vpack.c.bf16 %v399_v37, %v394_v36  ;;  %v393_v42 = vld [vmem:[%s3733_s3 + $0xf0] sm:$0xff]  ;;  %v398_v43 = vld [vmem:[%s3733_s3 + $0x118] sm:$0xff]  ;;  %1946 = vmatprep.subr.bf16.mxu1 %v1945_v31  ;;  %v1949_v44 = vpack.c.bf16 %v401_v41, %v396_v38  ;;  %v400_v46 = vld [vmem:[%s3733_s3 + $0x128] sm:$0xff] }
  0x66   : > { %v404_v47 = vld [vmem:[%s3733_s3 + $0x148] sm:$0xff]  ;;  %v409_v48 = vld [vmem:[%s3733_s3 + $0x170] sm:$0xff]  ;;  %v406_v49 = vld [vmem:[%s3733_s3 + $0x158] sm:$0xff]  ;;  %v1931_v51 = vpack.c.bf16 %v398_v43, %v393_v42  ;;  %v1951_v52 = vpack.c.bf16 %v400_v46, %v395_v45 }
  0x67   : > { %v411_v50 = vld [vmem:[%s3733_s3 + $0x180] sm:$0xff]  ;;  %v1933_v53 = vpack.c.bf16 %v409_v48, %v404_v47  ;;  %v408_v55 = vld [vmem:[%s3733_s3 + $0x168] sm:$0xff]  ;;  %v405_v56 = vld [vmem:[%s3733_s3 + $0x150] sm:$0xff] }
  0x68   : > { %1928 = vmatpush1.bf16.msra.mxu0 %v1927_v35  ;;  %1948 = vmatpush1.bf16.msra.mxu1 %v1947_v39  ;;  %v403_v54 = vld [vmem:[%s3733_s3 + $0x140] sm:$0xff]  ;;  %v1953_v57 = vpack.c.bf16 %v411_v50, %v406_v49  ;;  %v410_v58 = vld [vmem:[%s3733_s3 + $0x178] sm:$0xff]  ;;  %v372_v60 = vld [vmem:[%s3733_s3 + $0x48] sm:$0xff] }
  0x69   : > { %1930 = vmatprep.subr.bf16.mxu0 %v1929_v40  ;;  %1950 = vmatprep.subr.bf16.mxu1 %v1949_v44  ;;  %v367_v59 = vld [vmem:[%s3733_s3 + $0x20] sm:$0xff]  ;;  %v1935_v61 = vpack.c.bf16 %v408_v55, %v403_v54  ;;  %v1955_v62 = vpack.c.bf16 %v410_v58, %v405_v56  ;;  %v377_v1 = vld [vmem:[%s3733_s3 + $0x70] sm:$0xff]  ;;  %v382_v2 = vld [vmem:[%s3733_s3 + $0x98] sm:$0xff] }
  0x6a   : > { %v1957_v63 = vpack.c.bf16 %v372_v60, %v367_v59  ;;  %v2908_v3 = vld [vmem:[%s2899_s15] sm:$0xff]  ;;  %v1961_v4 = vpack.c.bf16 %v382_v2, %v377_v1  ;;  %v392_v6 = vld [vmem:[%s3733_s3 + $0xe8] sm:$0xff]  ;;  %v397_v9 = vld [vmem:[%s3733_s3 + $0x110] sm:$0xff] }
  0x6b   : > { %v387_v5 = vld [vmem:[%s3733_s3 + $0xc0] sm:$0xff]  ;;  %v2921_v7 = vld [vmem:[%s2899_s15 + $0x8] sm:$0xff]  ;;  %v402_v10 = vld [vmem:[%s3733_s3 + $0x138] sm:$0xff] }
  0x6c   : > { %1932 = vmatpush1.bf16.msra.mxu0 %v1931_v51  ;;  %1952 = vmatpush1.bf16.msra.mxu1 %v1951_v52  ;;  %v1965_v8 = vpack.c.bf16 %v392_v6, %v387_v5  ;;  %v2937_v11 = vld [vmem:[%s2899_s15 + $0x10] sm:$0xff]  ;;  %v1969_v12 = vpack.c.bf16 %v402_v10, %v397_v9  ;;  %v407_v13 = vld [vmem:[%s3733_s3 + $0x160] sm:$0xff]  ;;  %v412_v14 = vld [vmem:[%s3733_s3 + $0x188] sm:$0xff] }
  0x6d   : > { %1934 = vmatprep.subr.bf16.mxu0 %v1933_v53  ;;  %1954 = vmatprep.subr.bf16.mxu1 %v1953_v57  ;;  %v2952_v15 = vld [vmem:[%s2899_s15 + $0x18] sm:$0xff]  ;;  %v1973_v16 = vpack.c.bf16 %v412_v14, %v407_v13  ;;  %v2961_v17 = vld [vmem:[%s2899_s15 + $0x20] sm:$0xff]  ;;  %v2970_v18 = vld [vmem:[%s2899_s15 + $0x28] sm:$0xff] }
  0x6e   : > { %v353_v19 = vld [vmem:[%s2899_s15 + $0x30] sm:$0xff]  ;;  %v354_v20 = vld [vmem:[%s2899_s15 + $0x38] sm:$0xff]  ;;  %v355_v21 = vld [vmem:[%s2899_s15 + $0x40] sm:$0xff] }
  0x6f   : > { %v356_v22 = vld [vmem:[%s2899_s15 + $0x48] sm:$0xff]  ;;  %v357_v23 = vld [vmem:[%s2899_s15 + $0x50] sm:$0xff]  ;;  %v358_v24 = vld [vmem:[%s2899_s15 + $0x58] sm:$0xff] }
  0x70   : > { %1936 = vmatpush1.bf16.msra.mxu0 %v1935_v61  ;;  %1956 = vmatpush1.bf16.msra.mxu1 %v1955_v62  ;;  %v359_v25 = vld [vmem:[%s2899_s15 + $0x60] sm:$0xff]  ;;  %v360_v26 = vld [vmem:[%s2899_s15 + $0x68] sm:$0xff]  ;;  %v361_v27 = vld [vmem:[%s2899_s15 + $0x70] sm:$0xff] }
  0x71   : > { %1958 = vmatprep.subr.bf16.mxu0 %v1957_v63  ;;  %1977 = vmatprep.subr.bf16.mxu1 %v1957_v63  ;;  %v362_v28 = vld [vmem:[%s2899_s15 + $0x78] sm:$0xff]  ;;  %v3055_v31 = vld [vmem:[%s3734_s4] sm:$0x1f] }
  0x73   : > { %1723 = vmatmul.mubr.msk.f32.vlgmr.msra.gmra.mrb[0].mxu0 %vm440_vm0, %v2908_v3  ;;  %1739 = vmatmul.mubr.msk.f32.vlgmr.msra.gmra.mrb[0].mxu1 %vm440_vm0, %v2908_v3 }
  0x74   : > { %1960 = vmatpush3.bf16.msra.mxu0 %v1957_v63  ;;  %1982 = vmatpush3.bf16.msra.mxu1 %v1957_v63 }
  0x75   : > { %559 = vmatprep.mubr.f32.mxu0 %v2536_v0  ;;  %720 = vmatprep.mubr.f32.mxu1 %v2536_v0 }
  0x76   : > { %1962 = vmatprep.subr.bf16.mxu0 %v1961_v4  ;;  %1978 = vmatprep.subr.bf16.mxu1 %v1961_v4 }
  0x77   : > { %1724 = vmatmul.mubr.msk.f32.gmra.mrb[2].mxu0 %vm440_vm0, %v2921_v7  ;;  %1740 = vmatmul.mubr.msk.f32.gmra.mrb[2].mxu1 %vm440_vm0, %v2921_v7 }
  0x78   : > { %565 = vmatprep.mubr.f32.mxu0 %v2536_v0  ;;  %726 = vmatprep.mubr.f32.mxu1 %v2536_v0 }
  0x79   : > { %1964 = vmatpush3.bf16.msra.mxu0 %v1961_v4  ;;  %1983 = vmatpush3.bf16.msra.mxu1 %v1961_v4 }
  0x7a   : > { %1966 = vmatprep.subr.bf16.mxu0 %v1965_v8  ;;  %1979 = vmatprep.subr.bf16.mxu1 %v1965_v8 }
  0x7b   : > { %1725 = vmatmul.mubr.msk.f32.gmra.mrb[4].mxu0 %vm440_vm0, %v2937_v11  ;;  %1741 = vmatmul.mubr.msk.f32.gmra.mrb[4].mxu1 %vm440_vm0, %v2937_v11 }
  0x7c   : > { %571 = vmatprep.mubr.f32.mxu0 %v2536_v0  ;;  %732 = vmatprep.mubr.f32.mxu1 %v2536_v0 }
  0x7d   : > { %1968 = vmatpush3.bf16.msra.mxu0 %v1965_v8  ;;  %1984 = vmatpush3.bf16.msra.mxu1 %v1965_v8 }
  0x7e   : > { %1970 = vmatprep.subr.bf16.mxu0 %v1969_v12  ;;  %1980 = vmatprep.subr.bf16.mxu1 %v1969_v12 }
  0x7f   : > { %1726 = vmatmul.mubr.msk.f32.gmra.mrb[6].mxu0 %vm440_vm0, %v2952_v15  ;;  %1742 = vmatmul.mubr.msk.f32.gmra.mrb[6].mxu1 %vm440_vm0, %v2952_v15 }
  0x80   : > { %577 = vmatprep.mubr.f32.mxu0 %v2536_v0  ;;  %738 = vmatprep.mubr.f32.mxu1 %v2536_v0 }
  0x81   : > { %1972 = vmatpush3.bf16.msra.mxu0 %v1969_v12  ;;  %1985 = vmatpush3.bf16.msra.mxu1 %v1969_v12 }
  0x82   : > { %1974 = vmatprep.subr.bf16.mxu0 %v1973_v16  ;;  %1981 = vmatprep.subr.bf16.mxu1 %v1973_v16 }
  0x83   : > { %1727 = vmatmul.mubr.msk.f32.gmra.mrb[8].mxu0 %vm440_vm0, %v2961_v17  ;;  %1743 = vmatmul.mubr.msk.f32.gmra.mrb[8].mxu1 %vm440_vm0, %v2961_v17 }
  0x84   : > { %583 = vmatprep.mubr.f32.mxu0 %v2536_v0  ;;  %744 = vmatprep.mubr.f32.mxu1 %v2536_v0 }
  0x85   : > { %1976 = vmatpush3.bf16.msra.mxu0 %v1973_v16  ;;  %1986 = vmatpush3.bf16.msra.mxu1 %v1973_v16 }
  0x87   : > { %1728 = vmatmul.mubr.msk.f32.gmra.mrb[10].mxu0 %vm440_vm0, %v2970_v18  ;;  %1744 = vmatmul.mubr.msk.f32.gmra.mrb[10].mxu1 %vm440_vm0, %v2970_v18 }
  0x88   : > { %589 = vmatprep.mubr.f32.mxu0 %v2536_v0  ;;  %750 = vmatprep.mubr.f32.mxu1 %v2536_v0 }
  0x8b   : > { %1729 = vmatmul.mubr.msk.f32.gmra.mrb[12].mxu0 %vm440_vm0, %v353_v19  ;;  %1745 = vmatmul.mubr.msk.f32.gmra.mrb[12].mxu1 %vm440_vm0, %v353_v19 }
  0x8c   : > { %595 = vmatprep.mubr.f32.mxu0 %v2536_v0  ;;  %756 = vmatprep.mubr.f32.mxu1 %v2536_v0 }
  0x8f   : > { %1730 = vmatmul.mubr.msk.f32.gmra.mrb[14].mxu0 %vm440_vm0, %v354_v20  ;;  %1746 = vmatmul.mubr.msk.f32.gmra.mrb[14].mxu1 %vm440_vm0, %v354_v20 }
  0x90   : > { %601 = vmatprep.mubr.f32.mxu0 %v2536_v0  ;;  %762 = vmatprep.mubr.f32.mxu1 %v2536_v0 }
  0x93   : > { %1731 = vmatmul.mubr.msk.f32.gmra.mrb[16].mxu0 %vm440_vm0, %v355_v21  ;;  %1747 = vmatmul.mubr.msk.f32.gmra.mrb[16].mxu1 %vm440_vm0, %v355_v21 }
  0x94   : > { %607 = vmatprep.mubr.f32.mxu0 %v2536_v0  ;;  %768 = vmatprep.mubr.f32.mxu1 %v2536_v0 }
  0x97   : > { %1732 = vmatmul.mubr.msk.f32.gmra.mrb[18].mxu0 %vm440_vm0, %v356_v22  ;;  %1748 = vmatmul.mubr.msk.f32.gmra.mrb[18].mxu1 %vm440_vm0, %v356_v22 }
  0x98   : > { %613 = vmatprep.mubr.f32.mxu0 %v2536_v0  ;;  %774 = vmatprep.mubr.f32.mxu1 %v2536_v0 }
  0x9b   : > { %1733 = vmatmul.mubr.msk.f32.gmra.mrb[20].mxu0 %vm440_vm0, %v357_v23  ;;  %1749 = vmatmul.mubr.msk.f32.gmra.mrb[20].mxu1 %vm440_vm0, %v357_v23 }
  0x9c   : > { %619 = vmatprep.mubr.f32.mxu0 %v2536_v0  ;;  %780 = vmatprep.mubr.f32.mxu1 %v2536_v0 }
  0x9f   : > { %1734 = vmatmul.mubr.msk.f32.gmra.mrb[22].mxu0 %vm440_vm0, %v358_v24  ;;  %1750 = vmatmul.mubr.msk.f32.gmra.mrb[22].mxu1 %vm440_vm0, %v358_v24 }
  0xa0   : > { %625 = vmatprep.mubr.f32.mxu0 %v2536_v0  ;;  %786 = vmatprep.mubr.f32.mxu1 %v2536_v0 }
  0xa3   : > { %1735 = vmatmul.mubr.msk.f32.gmra.mrb[24].mxu0 %vm440_vm0, %v359_v25  ;;  %1751 = vmatmul.mubr.msk.f32.gmra.mrb[24].mxu1 %vm440_vm0, %v359_v25 }
  0xa4   : > { %631 = vmatprep.mubr.f32.mxu0 %v2536_v0  ;;  %792 = vmatprep.mubr.f32.mxu1 %v2536_v0 }
  0xa7   : > { %1736 = vmatmul.mubr.msk.f32.gmra.mrb[26].mxu0 %vm440_vm0, %v360_v26  ;;  %1752 = vmatmul.mubr.msk.f32.gmra.mrb[26].mxu1 %vm440_vm0, %v360_v26 }
  0xa8   : > { %637 = vmatprep.mubr.f32.mxu0 %v2536_v0  ;;  %798 = vmatprep.mubr.f32.mxu1 %v2536_v0 }
  0xab   : > { %1737 = vmatmul.mubr.msk.f32.gmra.mrb[28].mxu0 %vm440_vm0, %v361_v27  ;;  %1753 = vmatmul.mubr.msk.f32.gmra.mrb[28].mxu1 %vm440_vm0, %v361_v27 }
  0xac   : > { %643 = vmatprep.mubr.f32.mxu0 %v2536_v0  ;;  %804 = vmatprep.mubr.f32.mxu1 %v2536_v0  ;;  %v415_v0 = vlaneseq }
  0xae   : > { %v3049_v29 = vshrl.u32 %v415_v0, 7 }
  0xaf   : > { %1738 = vmatmul.mubr.msk.f32.gmra.mrb[30].mxu0 %vm440_vm0, %v362_v28  ;;  %1754 = vmatmul.mubr.msk.f32.gmra.mrb[30].mxu1 %vm440_vm0, %v362_v28 }
  0xb0   : > { %1893 = vmatprep.mubr.msk.f32.mxu0 %vm440_vm0, %v2908_v3  ;;  %1905 = vmatprep.mubr.msk.f32.mxu1 %vm440_vm0, %v355_v21  ;;  %v417_v30 = vsub.s32 0, %v3049_v29  ;;  %v425_v32 = vsub.s32 2, %v3049_v29  ;;  %v421_v33 = vsub.s32 1, %v3049_v29  ;;  %v429_v34 = vsub.s32 3, %v3049_v29 }
  0xb2   : > { %v3061_v35 = vrot.slane %v3055_v31, %v417_v30  ;;  %v3064_v36 = vrot.slane %v3055_v31, %v425_v32  ;;  %v3067_v37 = vrot.slane %v3055_v31, %v421_v33  ;;  %v3070_v38 = vrot.slane %v3055_v31, %v429_v34 }
  0xb3   : > { %1894 = vmatmul.mubr.msk.f32.vlgmr.msra.gmra.mrb[32].mxu0 %vm440_vm0, %v2921_v7  ;;  %1906 = vmatmul.mubr.msk.f32.vlgmr.msra.gmra.mrb[32].mxu1 %vm440_vm0, %v356_v22 }
  0xb4   : > { %1896 = vmatprep.mubr.msk.f32.mxu0 %vm440_vm0, %v2937_v11  ;;  %1908 = vmatprep.mubr.msk.f32.mxu1 %vm440_vm0, %v357_v23 }
  0xb7   : > { %1897 = vmatmul.mubr.msk.f32.gmra.mrb[34].mxu0 %vm440_vm0, %v2952_v15  ;;  %1909 = vmatmul.mubr.msk.f32.gmra.mrb[34].mxu1 %vm440_vm0, %v358_v24 }
  0xb8   : > { %1899 = vmatprep.mubr.msk.f32.mxu0 %vm440_vm0, %v2961_v17  ;;  %1911 = vmatprep.mubr.msk.f32.mxu1 %vm440_vm0, %v359_v25 }
  0xbb   : > { %1900 = vmatmul.mubr.msk.f32.gmra.mrb[36].mxu0 %vm440_vm0, %v2970_v18  ;;  %1912 = vmatmul.mubr.msk.f32.gmra.mrb[36].mxu1 %vm440_vm0, %v360_v26 }
  0xbc   : > { %1902 = vmatprep.mubr.msk.f32.mxu0 %vm440_vm0, %v353_v19  ;;  %1914 = vmatprep.mubr.msk.f32.mxu1 %vm440_vm0, %v361_v27 }
  0xbf   : > { %1903 = vmatmul.mubr.msk.f32.gmra.mrb[38].mxu0 %vm440_vm0, %v354_v20  ;;  %1915 = vmatmul.mubr.msk.f32.gmra.mrb[38].mxu1 %vm440_vm0, %v362_v28 }
 0x146   : > { %v555_v39 = vpop.f32.mrb[0].mxu0  ;;  %v716_v41 = vpop.f32.mrb[0].mxu1 }
 0x147   : > { %v556_v40 = vadd.f32 %v555_v39, %v3061_v35  ;;  %v557_v42 = vpop.f32.mrb[1].mxu0  ;;  %v717_v43 = vadd.f32 %v716_v41, %v3064_v36  ;;  %v718_v45 = vpop.f32.mrb[1].mxu1 }
 0x148   : > { %v558_v44 = vadd.f32 %v557_v42, %v3067_v37  ;;  %v719_v47 = vadd.f32 %v718_v45, %v3070_v38 }
 0x149   : > { %v1771_v46 = vmul.f32 -1.442695, %v556_v40  ;;  %v1803_v48 = vmul.f32 -1.442695, %v717_v43 }
 0x14a   : > { %v1787_v49 = vmul.f32 -1.442695, %v558_v44  ;;  %v561_v50 = vpop.f32.mrb[2].mxu0  ;;  %v1819_v51 = vmul.f32 -1.442695, %v719_v47  ;;  %v722_v53 = vpop.f32.mrb[2].mxu1 }
 0x14b   : > { %2048 = vpow2.f32 %v1771_v46  ;;  %v562_v52 = vadd.f32 %v561_v50, %v3061_v35  ;;  %v563_v54 = vpop.f32.mrb[3].mxu0  ;;  %v723_v55 = vadd.f32 %v722_v53, %v3064_v36  ;;  %v724_v57 = vpop.f32.mrb[3].mxu1 }
 0x14c   : > { %2050 = vpow2.f32 %v1803_v48  ;;  %v564_v56 = vadd.f32 %v563_v54, %v3067_v37  ;;  %v725_v59 = vadd.f32 %v724_v57, %v3070_v38 }
 0x14d   : > { %2052 = vpow2.f32 %v1787_v49  ;;  %v1772_v58 = vmul.f32 -1.442695, %v562_v52  ;;  %v1804_v60 = vmul.f32 -1.442695, %v723_v55 }
 0x14e   : > { %2054 = vpow2.f32 %v1819_v51  ;;  %v1788_v61 = vmul.f32 -1.442695, %v564_v56  ;;  %v567_v62 = vpop.f32.mrb[4].mxu0  ;;  %v1820_v63 = vmul.f32 -1.442695, %v725_v59  ;;  %v728_v2 = vpop.f32.mrb[4].mxu1 }
 0x14f   : > { %2056 = vpow2.f32 %v1772_v58  ;;  %v568_v1 = vadd.f32 %v567_v62, %v3061_v35  ;;  %v569_v3 = vpop.f32.mrb[5].mxu0  ;;  %v729_v4 = vadd.f32 %v728_v2, %v3064_v36  ;;  %v730_v6 = vpop.f32.mrb[5].mxu1 }
 0x150   : > { %2058 = vpow2.f32 %v1804_v60  ;;  %v570_v5 = vadd.f32 %v569_v3, %v3067_v37  ;;  %v731_v8 = vadd.f32 %v730_v6, %v3070_v38 }
 0x151   : > { %2060 = vpow2.f32 %v1788_v61  ;;  %v1773_v7 = vmul.f32 -1.442695, %v568_v1  ;;  %v1805_v9 = vmul.f32 -1.442695, %v729_v4 }
 0x152   : > { %2062 = vpow2.f32 %v1820_v63  ;;  %v1789_v10 = vmul.f32 -1.442695, %v570_v5  ;;  %v573_v11 = vpop.f32.mrb[6].mxu0  ;;  %v1821_v12 = vmul.f32 -1.442695, %v731_v8  ;;  %v734_v14 = vpop.f32.mrb[6].mxu1 }
 0x153   : > { %2064 = vpow2.f32 %v1773_v7  ;;  %v574_v13 = vadd.f32 %v573_v11, %v3061_v35  ;;  %v575_v15 = vpop.f32.mrb[7].mxu0  ;;  %v736_v16 = vpop.f32.mrb[7].mxu1  ;;  %v735_v48 = vadd.f32 %v734_v14, %v3064_v36 }
 0x154   : > { %2066 = vpow2.f32 %v1805_v9  ;;  %v576_v51 = vadd.f32 %v575_v15, %v3067_v37  ;;  %v737_v55 = vadd.f32 %v736_v16, %v3070_v38 }
 0x155   : > { %v2049_v17 = vpop.eup %2048  ;;  %2068 = vpow2.f32 %v1789_v10  ;;  %v1774_v18 = vmul.f32 -1.442695, %v574_v13  ;;  %v1806_v1 = vmul.f32 -1.442695, %v735_v48 }
 0x156   : > { %v2051_v19 = vpop.eup %2050  ;;  %v1004_v20 = vadd.f32 1.0, %v2049_v17  ;;  %2070 = vpow2.f32 %v1821_v12  ;;  %v579_v21 = vpop.f32.mrb[8].mxu0  ;;  %v1790_v5 = vmul.f32 -1.442695, %v576_v51  ;;  %v1822_v9 = vmul.f32 -1.442695, %v737_v55 }
 0x157   : > { %v2053_v22 = vpop.eup %2052  ;;  %v1196_v23 = vadd.f32 1.0, %v2051_v19  ;;  %2072 = vpow2.f32 %v1774_v18  ;;  %v740_v24 = vpop.f32.mrb[8].mxu1  ;;  %v580_v60 = vadd.f32 %v579_v21, %v3061_v35 }
 0x158   : > { %v581_v25 = vpop.f32.mrb[9].mxu0  ;;  %v2055_v26 = vpop.eup %2054  ;;  %2074 = vrcp.f32 %v1004_v20  ;;  %v1100_v27 = vadd.f32 1.0, %v2053_v22  ;;  %v741_v2 = vadd.f32 %v740_v24, %v3064_v36 }
 0x159   : > { %v742_v28 = vpop.f32.mrb[9].mxu1  ;;  %v2057_v0 = vpop.eup %2056  ;;  %2076 = vrcp.f32 %v1196_v23  ;;  %v1292_v30 = vadd.f32 1.0, %v2055_v26  ;;  %v582_v6 = vadd.f32 %v581_v25, %v3067_v37  ;;  %v1775_v14 = vmul.f32 -1.442695, %v580_v60 }
 0x15a   : > { %v2059_v32 = vpop.eup %2058  ;;  %2078 = vrcp.f32 %v1100_v27  ;;  %v1005_v33 = vadd.f32 1.0, %v2057_v0  ;;  %v585_v34 = vpop.f32.mrb[10].mxu0  ;;  %v743_v10 = vadd.f32 %v742_v28, %v3070_v38  ;;  %v1807_v18 = vmul.f32 -1.442695, %v741_v2 }
 0x15b   : > { %v2061_v39 = vpop.eup %2060  ;;  %2080 = vrcp.f32 %v1292_v30  ;;  %v1197_v40 = vadd.f32 1.0, %v2059_v32  ;;  %v746_v41 = vpop.f32.mrb[10].mxu1  ;;  %v586_v15 = vadd.f32 %v585_v34, %v3061_v35  ;;  %v1791_v21 = vmul.f32 -1.442695, %v582_v6 }
 0x15c   : > { %v587_v42 = vpop.f32.mrb[11].mxu0  ;;  %v2063_v43 = vpop.eup %2062  ;;  %2082 = vrcp.f32 %v1005_v33  ;;  %v1101_v44 = vadd.f32 1.0, %v2061_v39  ;;  %v747_v19 = vadd.f32 %v746_v41, %v3064_v36  ;;  %v1823_v25 = vmul.f32 -1.442695, %v743_v10 }
 0x15d   : > { %v748_v45 = vpop.f32.mrb[11].mxu1  ;;  %v2065_v46 = vpop.eup %2064  ;;  %2084 = vrcp.f32 %v1197_v40  ;;  %v1293_v47 = vadd.f32 1.0, %v2063_v43  ;;  %v588_v22 = vadd.f32 %v587_v42, %v3067_v37  ;;  %v1776_v30 = vmul.f32 -1.442695, %v586_v15 }
 0x15e   : > { %v2067_v49 = vpop.eup %2066  ;;  %2086 = vrcp.f32 %v1101_v44  ;;  %v1006_v50 = vadd.f32 1.0, %v2065_v46  ;;  %v591_v52 = vpop.f32.mrb[12].mxu0  ;;  %v749_v26 = vadd.f32 %v748_v45, %v3070_v38  ;;  %v1808_v39 = vmul.f32 -1.442695, %v747_v19 }
 0x15f   : > { %v2069_v53 = vpop.eup %2068  ;;  %2088 = vrcp.f32 %v1293_v47  ;;  %v1198_v54 = vadd.f32 1.0, %v2067_v49  ;;  %v752_v56 = vpop.f32.mrb[12].mxu1  ;;  %v592_v32 = vadd.f32 %v591_v52, %v3061_v35  ;;  %v1792_v42 = vmul.f32 -1.442695, %v588_v22 }
 0x160   : > { %v3088_v57 = vpop.f32.mrb[13].mxu0  ;;  %v2071_v58 = vpop.eup %2070  ;;  %2090 = vrcp.f32 %v1006_v50  ;;  %v1102_v59 = vadd.f32 1.0, %v2069_v53  ;;  %v753_v40 = vadd.f32 %v752_v56, %v3064_v36  ;;  %v1824_v45 = vmul.f32 -1.442695, %v749_v26 }
 0x161   : > { %v3091_v61 = vpop.f32.mrb[13].mxu1  ;;  %v2073_v62 = vpop.eup %2072  ;;  %2092 = vrcp.f32 %v1198_v54  ;;  %v1294_v63 = vadd.f32 1.0, %v2071_v58  ;;  %v1777_v49 = vmul.f32 -1.442695, %v592_v32 }
 0x162   : > { %v3094_v3 = vpop.eup %2074  ;;  %2094 = vrcp.f32 %v1102_v59  ;;  %v1007_v4 = vadd.f32 1.0, %v2073_v62  ;;  %v3097_v7 = vpop.f32.mrb[14].mxu0  ;;  %v1809_v52 = vmul.f32 -1.442695, %v753_v40  ;;  %v594_v40 = vadd.f32 %v3088_v57, %v3067_v37 }
 0x163   : > { %3751 = vst [vmem:[#allocation14_spill] sm:$0xff] %v3094_v3  ;;  %v3099_v8 = vpop.eup %2076  ;;  %2096 = vrcp.f32 %v1294_v63  ;;  %v3102_v11 = vpop.f32.mrb[14].mxu1 }
 0x164   : > { %v3104_v12 = vpop.f32.mrb[15].mxu0  ;;  %v3106_v13 = vpop.eup %2078  ;;  %2098 = vrcp.f32 %v1007_v4 }
 0x165   : > { %v3109_v16 = vpop.f32.mrb[15].mxu1  ;;  %v3111_v17 = vpop.eup %2080  ;;  %2100 = vpow2.f32 %v1806_v1 }
 0x166   : > { %3752 = vst [vmem:[#allocation15_spill] sm:$0xff] %v3111_v17  ;;  %v3114_v20 = vpop.eup %2082  ;;  %2102 = vpow2.f32 %v1790_v5  ;;  %v3117_v23 = vpop.f32.mrb[16].mxu0 }
 0x167   : > { %v3119_v24 = vpop.eup %2084  ;;  %2104 = vpow2.f32 %v1822_v9  ;;  %v3122_v27 = vpop.f32.mrb[16].mxu1 }
 0x168   : > { %v3124_v28 = vpop.f32.mrb[17].mxu0  ;;  %v3126_v0 = vpop.eup %2086  ;;  %2106 = vpow2.f32 %v1775_v14 }
 0x169   : > { %v3129_v33 = vpop.f32.mrb[17].mxu1  ;;  %v3131_v34 = vpop.eup %2088  ;;  %2108 = vpow2.f32 %v1807_v18 }
 0x16a   : > { %3753 = vst [vmem:[#allocation16_spill] sm:$0xff] %v3131_v34  ;;  %v3134_v41 = vpop.eup %2090  ;;  %2110 = vpow2.f32 %v1791_v21  ;;  %v3136_v43 = vpop.f32.mrb[18].mxu0 }
 0x16b   : > { %3754 = vst [vmem:[#allocation17_spill] sm:$0xff] %v3134_v41  ;;  %v3138_v44 = vpop.eup %2092  ;;  %2112 = vpow2.f32 %v1823_v25  ;;  %v3140_v46 = vpop.f32.mrb[18].mxu1 }
 0x16c   : > { %v3142_v47 = vpop.f32.mrb[19].mxu0  ;;  %v3144_v48 = vpop.eup %2094  ;;  %2114 = vpow2.f32 %v1776_v30 }
 0x16d   : > { %v3146_v50 = vpop.f32.mrb[19].mxu1  ;;  %v3148_v51 = vpop.eup %2096  ;;  %2116 = vpow2.f32 %v1808_v39 }
 0x16e   : > { %3755 = vst [vmem:[#allocation18_spill] sm:$0xff] %v3148_v51  ;;  %v3150_v53 = vpop.eup %2098  ;;  %2118 = vpow2.f32 %v1792_v42  ;;  %v3152_v54 = vpop.f32.mrb[20].mxu0 }
 0x16f   : > { %3756 = vst [vmem:[#allocation19_spill] sm:$0xff] %v3150_v53  ;;  %v2101_v55 = vpop.eup %2100  ;;  %2120 = vpow2.f32 %v1824_v45  ;;  %v3154_v56 = vpop.f32.mrb[20].mxu1 }
 0x170   : > { %v3156_v58 = vpop.f32.mrb[21].mxu0  ;;  %v2103_v59 = vpop.eup %2102  ;;  %v1199_v60 = vadd.f32 1.0, %v2101_v55  ;;  %2122 = vpow2.f32 %v1777_v49  ;;  %v755_v55 = vadd.f32 %v3091_v61, %v3070_v38  ;;  %v1793_v61 = vmul.f32 -1.442695, %v594_v40 }
 0x171   : > { %v3158_v62 = vpop.f32.mrb[21].mxu1  ;;  %v2105_v63 = vpop.eup %2104  ;;  %v1103_v1 = vadd.f32 1.0, %v2103_v59  ;;  %2124 = vpow2.f32 %v1809_v52 }
 0x172   : > { %v2107_v2 = vpop.eup %2106  ;;  %2126 = vrcp.f32 %v1199_v60  ;;  %v1295_v4 = vadd.f32 1.0, %v2105_v63  ;;  %v3160_v5 = vpop.f32.mrb[22].mxu0 }
 0x173   : > { %v2109_v6 = vpop.eup %2108  ;;  %2128 = vrcp.f32 %v1103_v1  ;;  %v1008_v9 = vadd.f32 1.0, %v2107_v2  ;;  %v3162_v10 = vpop.f32.mrb[22].mxu1  ;;  %v598_v1 = vadd.f32 %v3097_v7, %v3061_v35 }
 0x174   : > { %v3164_v14 = vpop.f32.mrb[23].mxu0  ;;  %v2111_v15 = vpop.eup %2110  ;;  %2130 = vrcp.f32 %v1295_v4  ;;  %v1200_v18 = vadd.f32 1.0, %v2109_v6  ;;  %v759_v4 = vadd.f32 %v3102_v11, %v3064_v36  ;;  %v761_v11 = vadd.f32 %v3109_v16, %v3070_v38 }
 0x175   : > { %v3166_v19 = vpop.f32.mrb[23].mxu1  ;;  %v2113_v21 = vpop.eup %2112  ;;  %2132 = vrcp.f32 %v1008_v9  ;;  %v1104_v22 = vadd.f32 1.0, %v2111_v15  ;;  %v1778_v40 = vmul.f32 -1.442695, %v598_v1 }
 0x176   : > { %v2115_v25 = vpop.eup %2114  ;;  %2134 = vrcp.f32 %v1200_v18  ;;  %v1296_v26 = vadd.f32 1.0, %v2113_v21  ;;  %v3168_v30 = vpop.f32.mrb[24].mxu0  ;;  %v600_v18 = vadd.f32 %v3104_v12, %v3067_v37  ;;  %v604_v12 = vadd.f32 %v3117_v23, %v3061_v35 }
 0x177   : > { %v2117_v32 = vpop.eup %2116  ;;  %2136 = vrcp.f32 %v1104_v22  ;;  %v1009_v39 = vadd.f32 1.0, %v2115_v25  ;;  %v3172_v42 = vpop.f32.mrb[24].mxu1 }
 0x178   : > { %v3174_v45 = vpop.f32.mrb[25].mxu0  ;;  %v2119_v49 = vpop.eup %2118  ;;  %2138 = vrcp.f32 %v1296_v26  ;;  %v1201_v52 = vadd.f32 1.0, %v2117_v32  ;;  %v1825_v26 = vmul.f32 -1.442695, %v755_v55  ;;  %v1794_v16 = vmul.f32 -1.442695, %v600_v18 }
 0x179   : > { %v3178_v59 = vpop.f32.mrb[25].mxu1  ;;  %v2121_v60 = vpop.eup %2120  ;;  %2140 = vrcp.f32 %v1009_v39  ;;  %v1105_v63 = vadd.f32 1.0, %v2119_v49 }
 0x17a   : > { %v2123_v2 = vpop.eup %2122  ;;  %2142 = vrcp.f32 %v1201_v52  ;;  %v1297_v57 = vadd.f32 1.0, %v2121_v60  ;;  %v3184_v6 = vpop.f32.mrb[26].mxu0  ;;  %v1810_v52 = vmul.f32 -1.442695, %v759_v4  ;;  %v765_v60 = vadd.f32 %v3122_v27, %v3064_v36 }
 0x17b   : > { %v2125_v9 = vpop.eup %2124  ;;  %2144 = vrcp.f32 %v1105_v63  ;;  %v1010_v15 = vadd.f32 1.0, %v2123_v2  ;;  %v3188_v21 = vpop.f32.mrb[26].mxu1  ;;  %v606_v2 = vadd.f32 %v3124_v28, %v3067_v37  ;;  %v1826_v4 = vmul.f32 -1.442695, %v761_v11 }
 0x17c   : > { %v3190_v22 = vpop.f32.mrb[27].mxu0  ;;  %v3192_v7 = vpop.eup %2126  ;;  %2146 = vrcp.f32 %v1297_v57  ;;  %v1202_v25 = vadd.f32 1.0, %v2125_v9  ;;  %v767_v27 = vadd.f32 %v3129_v33, %v3070_v38  ;;  %v610_v28 = vadd.f32 %v3136_v43, %v3061_v35 }
 0x17d   : > { %v3196_v32 = vpop.f32.mrb[27].mxu1  ;;  %v3198_v39 = vpop.eup %2128  ;;  %2148 = vrcp.f32 %v1010_v15  ;;  %v1795_v33 = vmul.f32 -1.442695, %v606_v2 }
 0x17e   : > { %v3202_v49 = vpop.eup %2130  ;;  %2150 = vrcp.f32 %v1202_v25  ;;  %v3206_v55 = vpop.f32.mrb[28].mxu0  ;;  %v1811_v25 = vmul.f32 -1.442695, %v765_v60 }
 0x17f   : > { %3757 = vst [vmem:[#allocation20_spill] sm:$0xff] %v3202_v49  ;;  %v3208_v63 = vpop.eup %2132  ;;  %2152 = vpow2.f32 %v1793_v61  ;;  %v3212_v1 = vpop.f32.mrb[28].mxu1  ;;  %v1779_v61 = vmul.f32 -1.442695, %v604_v12 }
 0x180   : > { %3758 = vst [vmem:[#allocation21_spill] sm:$0xff] %v3208_v63  ;;  %v3214_v57 = vpop.f32.mrb[29].mxu0  ;;  %v3216_v23 = vpop.eup %2134  ;;  %2154 = vpow2.f32 %v1825_v26  ;;  %v771_v26 = vadd.f32 %v3140_v46, %v3064_v36 }
 0x181   : > { %3759 = vst [vmem:[#allocation22_spill] sm:$0xff] %v3216_v23  ;;  %v3220_v9 = vpop.f32.mrb[29].mxu1  ;;  %v3222_v15 = vpop.eup %2136  ;;  %2156 = vpow2.f32 %v1778_v40  ;;  %v612_v40 = vadd.f32 %v3142_v47, %v3067_v37 }
 0x182   : > { %3760 = vst [vmem:[#allocation23_spill] sm:$0xff] %v3222_v15  ;;  %v3226_v18 = vpop.eup %2138  ;;  %2158 = vpow2.f32 %v1810_v52  ;;  %v3230_v11 = vpop.f32.mrb[30].mxu0  ;;  %v1827_v52 = vmul.f32 -1.442695, %v767_v27 }
 0x183   : > { %3761 = vst [vmem:[#allocation24_spill] sm:$0xff] %v3226_v18  ;;  %v3232_v51 = vpop.eup %2140  ;;  %2160 = vpow2.f32 %v1794_v16  ;;  %v3236_v12 = vpop.f32.mrb[30].mxu1  ;;  %v1780_v18 = vmul.f32 -1.442695, %v610_v28  ;;  %v1812_v16 = vmul.f32 -1.442695, %v771_v26 }
 0x184   : > { %3762 = vst [vmem:[#allocation25_spill] sm:$0xff] %v3232_v51  ;;  %v3238_v49 = vpop.f32.mrb[31].mxu0  ;;  %v3240_v43 = vpop.eup %2142  ;;  %2162 = vpow2.f32 %v1826_v4  ;;  %v1796_v63 = vmul.f32 -1.442695, %v612_v40 }
 0x185   : > { %3763 = vst [vmem:[#allocation26_spill] sm:$0xff] %v3240_v43  ;;  %v3242_v60 = vpop.f32.mrb[31].mxu1  ;;  %v3244_v46 = vpop.eup %2144  ;;  %2164 = vpow2.f32 %v1779_v61 }
 0x186   : > { %3764 = vst [vmem:[#allocation27_spill] sm:$0xff] %v3244_v46  ;;  %v3246_v17 = vpop.eup %2146  ;;  %2166 = vpow2.f32 %v1811_v25  ;;  %v3248_v2 = vpop.f32.mrb[32].mxu0 }
 0x187   : > { %3765 = vst [vmem:[#allocation28_spill] sm:$0xff] %v3246_v17  ;;  %v3250_v47 = vpop.eup %2148  ;;  %2168 = vpow2.f32 %v1795_v33  ;;  %v3252_v51 = vpop.f32.mrb[32].mxu1 }
 0x188   : > { %3766 = vst [vmem:[#allocation29_spill] sm:$0xff] %v3250_v47  ;;  %v3254_v4 = vpop.f32.mrb[33].mxu0  ;;  %v3256_v27 = vpop.eup %2150  ;;  %2170 = vpow2.f32 %v1827_v52 }
 0x189   : > { %3767 = vst [vmem:[#allocation30_spill] sm:$0xff] %v3256_v27  ;;  %v3258_v41 = vpop.f32.mrb[33].mxu1  ;;  %v2153_v61 = vpop.eup %2152  ;;  %2172 = vpow2.f32 %v1780_v18 }
 0x18a   : > { %v2155_v28 = vpop.eup %2154  ;;  %v1106_v25 = vadd.f32 1.0, %v2153_v61  ;;  %2174 = vpow2.f32 %v1812_v16  ;;  %v3260_v26 = vpop.f32.mrb[34].mxu0 }
 0x18b   : > { %v2157_v17 = vpop.eup %2156  ;;  %v1298_v47 = vadd.f32 1.0, %v2155_v28  ;;  %2176 = vpow2.f32 %v1796_v63  ;;  %v3262_v33 = vpop.f32.mrb[34].mxu1 }
 0x18c   : > { %v3264_v40 = vpop.f32.mrb[35].mxu0  ;;  %v2159_v34 = vpop.eup %2158  ;;  %2178 = vrcp.f32 %v1106_v25  ;;  %v1011_v53 = vadd.f32 1.0, %v2157_v17 }
 0x18d   : > { %v3266_v52 = vpop.f32.mrb[35].mxu1  ;;  %v2161_v3 = vpop.eup %2160  ;;  %2180 = vrcp.f32 %v1298_v47  ;;  %v1203_v18 = vadd.f32 1.0, %v2159_v34 }
 0x18e   : > { %v2163_v27 = vpop.eup %2162  ;;  %2182 = vrcp.f32 %v1011_v53  ;;  %v1107_v16 = vadd.f32 1.0, %v2161_v3  ;;  %v3268_v61 = vpop.f32.mrb[36].mxu0  ;;  %v773_v3 = vadd.f32 %v3146_v50, %v3070_v38 }
 0x18f   : > { %v2165_v46 = vpop.eup %2164  ;;  %2184 = vrcp.f32 %v1203_v18  ;;  %v1299_v63 = vadd.f32 1.0, %v2163_v27  ;;  %v3270_v28 = vpop.f32.mrb[36].mxu1  ;;  %v616_v27 = vadd.f32 %v3152_v54, %v3061_v35 }
 0x190   : > { %v3272_v43 = vpop.f32.mrb[37].mxu0  ;;  %v2167_v15 = vpop.eup %2166  ;;  %2186 = vrcp.f32 %v1107_v16  ;;  %v1012_v17 = vadd.f32 1.0, %v2165_v46  ;;  %v777_v46 = vadd.f32 %v3154_v56, %v3064_v36 }
 0x191   : > { %3768 = vst [vmem:[#allocation31_spill] sm:$0xff] %v3272_v43  ;;  %v3274_v25 = vpop.f32.mrb[37].mxu1  ;;  %v2169_v23 = vpop.eup %2168  ;;  %2188 = vrcp.f32 %v1299_v63  ;;  %v1204_v34 = vadd.f32 1.0, %v2167_v15 }
 0x192   : > { %3769 = vst [vmem:[#allocation32_spill] sm:$0xff] %v3274_v25  ;;  %v2171_v53 = vpop.eup %2170  ;;  %2190 = vrcp.f32 %v1012_v17  ;;  %v1108_v47 = vadd.f32 1.0, %v2169_v23  ;;  %v3280_v18 = vpop.f32.mrb[38].mxu0  ;;  %v618_v23 = vadd.f32 %v3156_v58, %v3067_v37  ;;  %v1813_v58 = vmul.f32 -1.442695, %v777_v46 }
 0x193   : > { %3770 = vst [vmem:[#allocation33_spill] sm:$0xff] %v3280_v18  ;;  %v2173_v43 = vpop.eup %2172  ;;  %2192 = vrcp.f32 %v1204_v34  ;;  %v1300_v16 = vadd.f32 1.0, %v2171_v53  ;;  %v3284_v25 = vpop.f32.mrb[38].mxu1  ;;  %v1828_v34 = vmul.f32 -1.442695, %v773_v3  ;;  %v779_v53 = vadd.f32 %v3158_v62, %v3070_v38 }
 0x194   : > { %3771 = vst [vmem:[#allocation34_spill] sm:$0xff] %v3284_v25  ;;  %v3286_v15 = vpop.f32.mrb[39].mxu0  ;;  %v2175_v63 = vpop.eup %2174  ;;  %2194 = vrcp.f32 %v1108_v47  ;;  %v1013_v50 = vadd.f32 1.0, %v2173_v43  ;;  %v622_v43 = vadd.f32 %v3160_v5, %v3061_v35  ;;  %v1797_v3 = vmul.f32 -1.442695, %v618_v23 }
 0x195   : > { %3772 = vst [vmem:[#allocation35_spill] sm:$0xff] %v3286_v15  ;;  %v3290_v17 = vpop.f32.mrb[39].mxu1  ;;  %v2177_v54 = vpop.eup %2176  ;;  %2196 = vrcp.f32 %v1300_v16  ;;  %v1205_v18 = vadd.f32 1.0, %v2175_v63  ;;  %v1781_v15 = vmul.f32 -1.442695, %v616_v27  ;;  %v783_v16 = vadd.f32 %v3162_v10, %v3064_v36 }
 0x196   : > { %v3294_v56 = vpop.eup %2178  ;;  %2198 = vrcp.f32 %v1013_v50  ;;  %v1109_v25 = vadd.f32 1.0, %v2177_v54  ;;  %v624_v62 = vadd.f32 %v3164_v14, %v3067_v37  ;;  %v1829_v27 = vmul.f32 -1.442695, %v779_v53 }
 0x197   : > { %v3298_v47 = vpop.eup %2180  ;;  %2200 = vrcp.f32 %v1205_v18  ;;  %v785_v5 = vadd.f32 %v3166_v19, %v3070_v38  ;;  %v1782_v18 = vmul.f32 -1.442695, %v622_v43  ;;  %v628_v10 = vadd.f32 %v3168_v30, %v3061_v35 }
 0x198   : > { %3773 = vst [vmem:[#allocation36_spill] sm:$0xff] %v3298_v47  ;;  %v3302_v63 = vpop.eup %2182  ;;  %2202 = vrcp.f32 %v1109_v25  ;;  %v1814_v25 = vmul.f32 -1.442695, %v783_v16  ;;  %v789_v14 = vadd.f32 %v3172_v42, %v3064_v36  ;;  %v630_v19 = vadd.f32 %v3174_v45, %v3067_v37 }
 0x199   : > { %3774 = vst [vmem:[#allocation37_spill] sm:$0xff] %v3302_v63  ;;  %v3306_v50 = vpop.eup %2184  ;;  %2204 = vpow2.f32 %v1828_v34  ;;  %v1798_v34 = vmul.f32 -1.442695, %v624_v62  ;;  %v791_v30 = vadd.f32 %v3178_v59, %v3070_v38 }
 0x19a   : > { %v3310_v54 = vpop.eup %2186  ;;  %2206 = vpow2.f32 %v1781_v15  ;;  %v1830_v15 = vmul.f32 -1.442695, %v785_v5  ;;  %v1815_v42 = vmul.f32 -1.442695, %v789_v14  ;;  %v1799_v62 = vmul.f32 -1.442695, %v630_v19 }
 0x19b   : > { %v3314_v46 = vpop.eup %2188  ;;  %2208 = vpow2.f32 %v1813_v58  ;;  %v1783_v58 = vmul.f32 -1.442695, %v628_v10 }
 0x19c   : > { %3775 = vst [vmem:[#allocation38_spill] sm:$0xff] %v3314_v46  ;;  %v3318_v23 = vpop.eup %2190  ;;  %2210 = vpow2.f32 %v1797_v3 }
 0x19d   : > { %v3322_v53 = vpop.eup %2192  ;;  %2212 = vpow2.f32 %v1829_v27  ;;  %v1831_v27 = vmul.f32 -1.442695, %v791_v30 }
 0x19e   : > { %v3326_v43 = vpop.eup %2194  ;;  %2214 = vpow2.f32 %v1782_v18 }
 0x19f   : > { %v3328_v16 = vpop.eup %2196  ;;  %2216 = vpow2.f32 %v1814_v25 }
 0x1a0   : > { %3776 = vst [vmem:[#allocation39_spill] sm:$0xff] %v3328_v16  ;;  %v3330_v3 = vpop.eup %2198  ;;  %2218 = vpow2.f32 %v1798_v34 }
 0x1a1   : > { %v3332_v45 = vpop.eup %2200  ;;  %2220 = vpow2.f32 %v1830_v15 }
 0x1a2   : > { %v3334_v5 = vpop.eup %2202  ;;  %2222 = vpow2.f32 %v1783_v58 }
 0x1a3   : > { %v2205_v59 = vpop.eup %2204  ;;  %2224 = vpow2.f32 %v1815_v42 }
 0x1a4   : > { %v2207_v47 = vpop.eup %2206  ;;  %v1301_v18 = vadd.f32 1.0, %v2205_v59  ;;  %2226 = vpow2.f32 %v1799_v62 }
 0x1a5   : > { %v2209_v10 = vpop.eup %2208  ;;  %v1014_v46 = vadd.f32 1.0, %v2207_v47  ;;  %2228 = vpow2.f32 %v1831_v27  ;;  %v634_v47 = vadd.f32 %v3184_v6, %v3061_v35 }
 0x1a6   : > { %v2211_v25 = vpop.eup %2210  ;;  %2230 = vrcp.f32 %v1301_v18  ;;  %v1206_v14 = vadd.f32 1.0, %v2209_v10 }
 0x1a7   : > { %v2213_v34 = vpop.eup %2212  ;;  %2232 = vrcp.f32 %v1014_v46  ;;  %v1110_v19 = vadd.f32 1.0, %v2211_v25  ;;  %v795_v46 = vadd.f32 %v3188_v21, %v3064_v36 }
 0x1a8   : > { %v2215_v16 = vpop.eup %2214  ;;  %2234 = vrcp.f32 %v1206_v14  ;;  %v1302_v15 = vadd.f32 1.0, %v2213_v34 }
 0x1a9   : > { %v2217_v30 = vpop.eup %2216  ;;  %2236 = vrcp.f32 %v1110_v19  ;;  %v1015_v58 = vadd.f32 1.0, %v2215_v16  ;;  %v636_v16 = vadd.f32 %v3190_v22, %v3067_v37  ;;  %v801_v22 = vadd.f32 %v3212_v1, %v3064_v36 }
 0x1aa   : > { %v2219_v63 = vpop.eup %2218  ;;  %2238 = vrcp.f32 %v1302_v15  ;;  %v1207_v42 = vadd.f32 1.0, %v2217_v30  ;;  %v1784_v15 = vmul.f32 -1.442695, %v634_v47  ;;  %v640_v30 = vadd.f32 %v3206_v55, %v3061_v35 }
 0x1ab   : > { %v2221_v59 = vpop.eup %2220  ;;  %2240 = vrcp.f32 %v1015_v58  ;;  %v1111_v62 = vadd.f32 1.0, %v2219_v63  ;;  %v797_v63 = vadd.f32 %v3196_v32, %v3070_v38  ;;  %v642_v32 = vadd.f32 %v3214_v57, %v3067_v37 }
 0x1ac   : > { %v2223_v27 = vpop.eup %2222  ;;  %2242 = vrcp.f32 %v1207_v42  ;;  %v1303_v18 = vadd.f32 1.0, %v2221_v59  ;;  %v1816_v42 = vmul.f32 -1.442695, %v795_v46  ;;  %v803_v55 = vadd.f32 %v3220_v9, %v3070_v38 }
 0x1ad   : > { %v2225_v10 = vpop.eup %2224  ;;  %2244 = vrcp.f32 %v1111_v62  ;;  %v1016_v25 = vadd.f32 1.0, %v2223_v27  ;;  %v1800_v62 = vmul.f32 -1.442695, %v636_v16  ;;  %v1832_v47 = vmul.f32 -1.442695, %v797_v63 }
 0x1ae   : > { %v2227_v14 = vpop.eup %2226  ;;  %2246 = vrcp.f32 %v1303_v18  ;;  %v1208_v34 = vadd.f32 1.0, %v2225_v10  ;;  %v1785_v46 = vmul.f32 -1.442695, %v640_v30  ;;  %v646_v1 = vadd.f32 %v3230_v11, %v3061_v35 }
 0x1af   : > { %v2229_v19 = vpop.eup %2228  ;;  %2248 = vrcp.f32 %v1016_v25  ;;  %v1112_v6 = vadd.f32 1.0, %v2227_v14  ;;  %v433_v10 = vsub.s32 4, %v3049_v29  ;;  %v1817_v57 = vmul.f32 -1.442695, %v801_v22 }
 0x1b0   : > { %v3346_v21 = vpop.eup %2230  ;;  %2250 = vrcp.f32 %v1208_v34  ;;  %v1304_v58 = vadd.f32 1.0, %v2229_v19  ;;  %v807_v16 = vadd.f32 %v3236_v12, %v3064_v36  ;;  %v1801_v9 = vmul.f32 -1.442695, %v642_v32 }
 0x1b1   : > { %v3350_v59 = vpop.eup %2232  ;;  %2252 = vrcp.f32 %v1112_v6  ;;  %v648_v34 = vadd.f32 %v3238_v49, %v3067_v37  ;;  %v1833_v35 = vmul.f32 -1.442695, %v803_v55  ;;  %v809_v29 = vadd.f32 %v3242_v60, %v3070_v38 }
 0x1b2   : > { %v3354_v27 = vpop.eup %2234  ;;  %2254 = vrcp.f32 %v1304_v58  ;;  %v1786_v19 = vmul.f32 -1.442695, %v646_v1  ;;  %v3378_v36 = vrot.slane %v3055_v31, %v433_v10  ;;  %v1818_v6 = vmul.f32 -1.442695, %v807_v16 }
 0x1b3   : > { %v3358_v18 = vpop.eup %2236  ;;  %2256 = vpow2.f32 %v1784_v15  ;;  %v1802_v37 = vmul.f32 -1.442695, %v648_v34  ;;  %v1834_v30 = vmul.f32 -1.442695, %v809_v29 }
 0x1b4   : > { %v3363_v25 = vpop.eup %2238  ;;  %2258 = vpow2.f32 %v1816_v42  ;;  %v883_v60 = vadd.f32 %v3248_v2, %v3378_v36 }
 0x1b5   : > { %3777 = vst [vmem:[#allocation40_spill] sm:$0xff] %v3363_v25  ;;  %v3367_v14 = vpop.eup %2240  ;;  %2260 = vpow2.f32 %v1800_v62  ;;  %v1431_v25 = vld [vmem:[%s2751_s11 + $0x58] sm:$0xff] }
 0x1b6   : > { %v3371_v63 = vpop.eup %2242  ;;  %2262 = vpow2.f32 %v1832_v47 }
 0x1b7   : > { %v3375_v11 = vpop.eup %2244  ;;  %2264 = vpow2.f32 %v1785_v46 }
 0x1b8   : > { %v3380_v12 = vpop.eup %2246  ;;  %2266 = vpow2.f32 %v1817_v57 }
 0x1b9   : > { %3778 = vst [vmem:[#allocation41_spill] sm:$0xff] %v3380_v12  ;;  %v3382_v15 = vpop.eup %2248  ;;  %2268 = vpow2.f32 %v1801_v9 }
 0x1ba   : > { %v3384_v49 = vpop.eup %2250  ;;  %2270 = vpow2.f32 %v1833_v35 }
 0x1bb   : > { %v3386_v38 = vpop.eup %2252  ;;  %2272 = vpow2.f32 %v1786_v19 }
 0x1bc   : > { %v3390_v31 = vpop.eup %2254  ;;  %2274 = vpow2.f32 %v1818_v6 }
 0x1bd   : > { %3779 = vst [vmem:[#allocation42_spill] sm:$0xff] %v3390_v31  ;;  %v2257_v58 = vpop.eup %2256  ;;  %2276 = vpow2.f32 %v1802_v37 }
 0x1be   : > { %v2259_v42 = vpop.eup %2258  ;;  %v1017_v22 = vadd.f32 1.0, %v2257_v58  ;;  %2278 = vpow2.f32 %v1834_v30  ;;  %v1373_v30 = vld [vmem:[%s2743_s28 + $0x8] sm:$0xff] }
 0x1bf   : > { %v2261_v62 = vpop.eup %2260  ;;  %v1209_v32 = vadd.f32 1.0, %v2259_v42  ;;  %2280 = vtanh.f32 %v883_v60 }
 0x1c0   : > { %v2263_v47 = vpop.eup %2262  ;;  %2282 = vrcp.f32 %v1017_v22  ;;  %v1113_v55 = vadd.f32 1.0, %v2261_v62  ;;  %v923_v22 = vadd.f32 %v3252_v51, %v3378_v36  ;;  %v918_v51 = vadd.f32 %v3258_v41, %v3378_v36 }
 0x1c1   : > { %v2265_v46 = vpop.eup %2264  ;;  %2284 = vrcp.f32 %v1209_v32  ;;  %v1305_v1 = vadd.f32 1.0, %v2263_v47  ;;  %v1420_v32 = vld [vmem:[%s2751_s11] sm:$0xff]  ;;  %v1421_v47 = vld [vmem:[%s2751_s11 + $0x8] sm:$0xff] }
 0x1c2   : > { %v2267_v10 = vpop.eup %2266  ;;  %2286 = vrcp.f32 %v1113_v55  ;;  %v1018_v2 = vadd.f32 1.0, %v2265_v46  ;;  %v878_v46 = vadd.f32 %v3254_v4, %v3378_v36  ;;  %v893_v4 = vadd.f32 %v3260_v26, %v3378_v36 }
 0x1c3   : > { %v2269_v57 = vpop.eup %2268  ;;  %2288 = vrcp.f32 %v1305_v1  ;;  %v1210_v16 = vadd.f32 1.0, %v2267_v10  ;;  %v1372_v10 = vld [vmem:[%s2743_s28] sm:$0xff] }
 0x1c4   : > { %v2271_v9 = vpop.eup %2270  ;;  %2290 = vrcp.f32 %v1018_v2  ;;  %v1114_v34 = vadd.f32 1.0, %v2269_v57  ;;  %v1389_v2 = vmul.f32 %v3126_v0, %v1373_v30  ;;  %v1422_v57 = vld [vmem:[%s2751_s11 + $0x10] sm:$0xff]  ;;  %v3415_v0 = vmul.f32 %v3099_v8, %v1420_v32  ;;  %v1424_v30 = vld [vmem:[%s2751_s11 + $0x20] sm:$0xff] }
 0x1c5   : > { %v2273_v35 = vpop.eup %2272  ;;  %2292 = vrcp.f32 %v1210_v16  ;;  %v1306_v29 = vadd.f32 1.0, %v2271_v9  ;;  %v3426_v26 = vmul.f32 %v3138_v44, %v1422_v57  ;;  %v933_v8 = vadd.f32 %v3262_v33, %v3378_v36 }
 0x1c6   : > { %v2275_v19 = vpop.eup %2274  ;;  %2294 = vrcp.f32 %v1114_v34  ;;  %v1019_v6 = vadd.f32 1.0, %v2273_v35  ;;  %v1374_v34 = vld [vmem:[%s2743_s28 + $0x10] sm:$0xff]  ;;  %v888_v44 = vadd.f32 %v3264_v40, %v3378_v36 }
 0x1c7   : > { %v2277_v37 = vpop.eup %2276  ;;  %2296 = vrcp.f32 %v1306_v29  ;;  %v1211_v60 = vadd.f32 1.0, %v2275_v19  ;;  %v1423_v29 = vld [vmem:[%s2751_s11 + $0x18] sm:$0xff] }
 0x1c8   : > { %v2279_v58 = vpop.eup %2278  ;;  %2298 = vrcp.f32 %v1019_v6  ;;  %v1115_v42 = vadd.f32 1.0, %v2277_v37  ;;  %v1375_v19 = vld [vmem:[%s2743_s28 + $0x18] sm:$0xff]  ;;  %v3423_v37 = vmul.f32 %v3106_v13, %v1372_v10  ;;  %v3444_v32 = vmul.f32 %v3192_v7, %v1423_v29  ;;  %v3782_v10 = vld [vmem:[#allocation23_spill] sm:$0xff] }
 0x1c9   : > { %v2281_v62 = vpop.eup %2280  ;;  %2300 = vrcp.f32 %v1211_v60  ;;  %v1307_v55 = vadd.f32 1.0, %v2279_v58  ;;  %v1376_v60 = vld [vmem:[%s2743_s28 + $0x20] sm:$0xff]  ;;  %v3435_v58 = vmul.f32 %v3144_v48, %v1374_v34  ;;  %v3447_v33 = vmul.f32 %v3198_v39, %v1375_v19  ;;  %v1378_v34 = vld [vmem:[%s2743_s28 + $0x30] sm:$0xff] }
 0x1ca   : > { %v3399_v1 = vpop.eup %2282  ;;  %2302 = vrcp.f32 %v1115_v42  ;;  %v1357_v16 = vmul.f32 %v2281_v62, %v3114_v20  ;;  %v1437_v20 = vmul.f32 %v3119_v24, %v1421_v47  ;;  %v1425_v42 = vld [vmem:[%s2751_s11 + $0x28] sm:$0xff]  ;;  %v1426_v47 = vld [vmem:[%s2751_s11 + $0x30] sm:$0xff]  ;;  %v928_v48 = vadd.f32 %v3266_v52, %v3378_v36  ;;  %v3784_v52 = vld [vmem:[#allocation26_spill] sm:$0xff] }
 0x1cb   : > { %v3407_v9 = vpop.eup %2284  ;;  %2304 = vrcp.f32 %v1307_v55  ;;  %v903_v7 = vadd.f32 %v3268_v61, %v3378_v36  ;;  %v3469_v57 = vmul.f32 %v3784_v52, %v1425_v42  ;;  %v3786_v61 = vld [vmem:[#allocation30_spill] sm:$0xff]  ;;  %v3788_v42 = vld [vmem:[#allocation31_spill] sm:$0xff]  ;;  %v1430_v52 = vld [vmem:[%s2751_s11 + $0x50] sm:$0xff] }
 0x1cc   : > { %v3412_v35 = vpop.eup %2286  ;;  %v1405_v41 = vadd.f32 %v1389_v2, %v1357_v16  ;;  %2306 = vtanh.f32 %v923_v22  ;;  %v1377_v22 = vld [vmem:[%s2743_s28 + $0x28] sm:$0xff]  ;;  %v3458_v2 = vmul.f32 %v3782_v10, %v1376_v60  ;;  %v3481_v19 = vmul.f32 %v3786_v61, %v1426_v47  ;;  %v1380_v60 = vld [vmem:[%s2743_s28 + $0x40] sm:$0xff]  ;;  %v3790_v47 = vld [vmem:[#allocation33_spill] sm:$0xff] }
 0x1cd   : > { %v3420_v6 = vpop.eup %2288  ;;  %2308 = vtanh.f32 %v878_v46  ;;  %v3781_v46 = vld [vmem:[#allocation22_spill] sm:$0xff]  ;;  %v3785_v16 = vld [vmem:[#allocation27_spill] sm:$0xff] }
 0x1ce   : > { %3780 = vst [vmem:[#allocation43_spill] sm:$0xff] %v3420_v6  ;;  %v3432_v24 = vpop.eup %2290  ;;  %v1453_v13 = vadd.f32 %v1437_v20, %v1405_v41  ;;  %2310 = vtanh.f32 %v918_v51  ;;  %v3455_v40 = vmul.f32 %v3781_v46, %v1424_v30  ;;  %v3472_v51 = vmul.f32 %v3785_v16, %v1377_v22  ;;  %3787 = vst [vmem:[#allocation23_spill] sm:$0xff] %v3481_v19  ;;  %v1379_v41 = vld [vmem:[%s2743_s28 + $0x38] sm:$0xff]  ;;  %v1428_v30 = vld [vmem:[%s2751_s11 + $0x40] sm:$0xff] }
 0x1cf   : > { %v3441_v62 = vpop.eup %2292  ;;  %2312 = vtanh.f32 %v893_v4  ;;  %v1427_v4 = vld [vmem:[%s2751_s11 + $0x38] sm:$0xff]  ;;  %v943_v20 = vadd.f32 %v3270_v28, %v3378_v36  ;;  %v898_v22 = vadd.f32 %v3788_v42, %v3378_v36  ;;  %v1429_v28 = vld [vmem:[%s2751_s11 + $0x48] sm:$0xff]  ;;  %v913_v16 = vadd.f32 %v3790_v47, %v3378_v36  ;;  %v3791_v61 = vld [vmem:[#allocation34_spill] sm:$0xff] }
 0x1d0   : > { %v3452_v55 = vpop.eup %2294  ;;  %1469 = vst [vmem:[%s3461_s20 + $0x8] sm:$0xff] %v1453_v13  ;;  %2314 = vtanh.f32 %v1453_v13  ;;  %v3789_v13 = vld [vmem:[#allocation32_spill] sm:$0xff]  ;;  %v1381_v10 = vld [vmem:[%s2743_s28 + $0x48] sm:$0xff]  ;;  %v3507_v6 = vmul.f32 %v3306_v50, %v1427_v4  ;;  %v948_v47 = vadd.f32 %v3290_v17, %v3378_v36  ;;  %v1432_v50 = vld [vmem:[%s2751_s11 + $0x60] sm:$0xff]  ;;  %v1445_v19 = vmul.f32 %v3332_v45, %v1429_v28 }
 0x1d1   : > { %v3466_v39 = vpop.eup %2296  ;;  %2316 = vtanh.f32 %v933_v8  ;;  %v938_v8 = vadd.f32 %v3789_v13, %v3378_v36  ;;  %v3504_v13 = vmul.f32 %v3294_v56, %v1378_v34  ;;  %v1396_v56 = vmul.f32 %v3326_v43, %v1380_v60  ;;  %v1383_v34 = vld [vmem:[%s2743_s28 + $0x58] sm:$0xff]  ;;  %v1433_v43 = vld [vmem:[%s2751_s11 + $0x68] sm:$0xff] }
 0x1d2   : > { %3783 = vst [vmem:[#allocation22_spill] sm:$0xff] %v3466_v39  ;;  %v3478_v29 = vpop.eup %2298  ;;  %2318 = vtanh.f32 %v888_v44  ;;  %v953_v44 = vadd.f32 %v3791_v61, %v3378_v36  ;;  %v3792_v39 = vld [vmem:[#allocation35_spill] sm:$0xff]  ;;  %v1444_v61 = vmul.f32 %v3322_v53, %v1428_v30  ;;  %v3525_v17 = vmul.f32 %v3354_v27, %v1430_v52  ;;  %v3793_v27 = vld [vmem:[#allocation14_spill] sm:$0xff] }
 0x1d3   : > { %v3490_v46 = vpop.eup %2300  ;;  %2320 = vtanh.f32 %v928_v48  ;;  %v908_v42 = vadd.f32 %v3792_v39, %v3378_v36  ;;  %v1382_v48 = vld [vmem:[%s2743_s28 + $0x50] sm:$0xff]  ;;  %v3516_v39 = vmul.f32 %v3310_v54, %v1379_v41  ;;  %v1384_v36 = vld [vmem:[%s2743_s28 + $0x60] sm:$0xff]  ;;  %v1447_v53 = vmul.f32 %v3371_v63, %v1431_v25 }
 0x1d4   : > { %v3501_v31 = vpop.eup %2302  ;;  %2322 = vtanh.f32 %v903_v7  ;;  %v1397_v7 = vmul.f32 %v3334_v5, %v1381_v10  ;;  %v1398_v41 = vmul.f32 %v3358_v18, %v1382_v48  ;;  %v1399_v45 = vmul.f32 %v3375_v11, %v1383_v34  ;;  %v1385_v18 = vld [vmem:[%s2743_s28 + $0x68] sm:$0xff]  ;;  %v1386_v11 = vld [vmem:[%s2743_s28 + $0x70] sm:$0xff] }
 0x1d5   : > { %v3513_v12 = vpop.eup %2304  ;;  %2324 = vtanh.f32 %v943_v20  ;;  %v3534_v5 = vmul.f32 %v3384_v49, %v1432_v50  ;;  %v3538_v28 = vmul.f32 %v3386_v38, %v1384_v36  ;;  %v3794_v10 = vld [vmem:[#allocation19_spill] sm:$0xff]  ;;  %v3555_v36 = vmul.f32 %v3452_v55, %v1386_v11 }
 0x1d6   : > { %v2307_v4 = vpop.eup %2306  ;;  %2326 = vtanh.f32 %v898_v22 }
 0x1d7   : > { %v2309_v54 = vpop.eup %2308  ;;  %v1365_v20 = vmul.f32 %v2307_v4, %v3330_v3  ;;  %2328 = vtanh.f32 %v938_v8  ;;  %v3543_v8 = vmul.f32 %v3407_v9, %v1433_v43  ;;  %v1401_v9 = vmul.f32 %v3412_v35, %v1385_v18  ;;  %v3796_v35 = vld [vmem:[#allocation17_spill] sm:$0xff] }
 0x1d8   : > { %v2311_v30 = vpop.eup %2310  ;;  %v1356_v60 = vmul.f32 %v2309_v54, %v3793_v27  ;;  %2330 = vtanh.f32 %v913_v16  ;;  %v3795_v16 = vld [vmem:[#allocation16_spill] sm:$0xff] }
 0x1d9   : > { %v2313_v22 = vpop.eup %2312  ;;  %v1413_v25 = vadd.f32 %v1397_v7, %v1365_v20  ;;  %v1364_v63 = vmul.f32 %v2311_v30, %v3318_v23  ;;  %2332 = vtanh.f32 %v953_v44  ;;  %v1435_v44 = vld [vmem:[%s2751_s11 + $0x78] sm:$0xff] }
 0x1da   : > { %v2315_v3 = vpop.eup %2314  ;;  %v1404_v49 = vadd.f32 %v3423_v37, %v1356_v60  ;;  %v1359_v52 = vmul.f32 %v2313_v22, %v3794_v10  ;;  %2334 = vtanh.f32 %v908_v42  ;;  %v1451_v43 = vmul.f32 %v3490_v46, %v1435_v44  ;;  %v3797_v20 = vld [vmem:[#allocation25_spill] sm:$0xff]  ;;  %v1434_v10 = vld [vmem:[%s2751_s11 + $0x70] sm:$0xff]  ;;  %v3801_v44 = vld [vmem:[#allocation15_spill] sm:$0xff] }
 0x1db   : > { %v2317_v38 = vpop.eup %2316  ;;  %v1501_v48 = vmul.f32 %v2315_v3, %v3795_v16  ;;  %v1461_v34 = vadd.f32 %v1445_v19, %v1413_v25  ;;  %v1412_v50 = vadd.f32 %v1396_v56, %v1364_v63  ;;  %2336 = vtanh.f32 %v948_v47  ;;  %v1387_v56 = vld [vmem:[%s2743_s28 + $0x78] sm:$0xff]  ;;  %s1551_s28 = sshll.u32 %s3461_s20, 4  ;;  %s3615_s28 = int_to_ptr.vmem [resolvable:$true] %s1551_s28 }
 0x1dc   : > { %v2319_v23 = vpop.eup %2318  ;;  %v1452_v4 = vadd.f32 %v3415_v0, %v1404_v49  ;;  %v1407_v37 = vadd.f32 %v3447_v33, %v1359_v52  ;;  %v1367_v7 = vmul.f32 %v2317_v38, %v3367_v14  ;;  %v3798_v25 = vld [vmem:[#allocation21_spill] sm:$0xff]  ;;  %s2428_s7 = scalar_lea.vmem %s3615_s28, 2048  ;;  %p2435_p7 = scmp.lt.s32.totalorder %s3615_s28, %s2433_s16 }
 0x1dd   : > { %v2321_v42 = vpop.eup %2320  ;;  %1517 = vst [vmem:[%s3558_s26 + $0x8] sm:$0xff] %v1501_v48  ;;  %1477 = vst [vmem:[%s3461_s20 + $0x48] sm:$0xff] %v1461_v34  ;;  %2338 = vtanh.f32 %v1461_v34  ;;  %v1460_v19 = vadd.f32 %v1444_v61, %v1412_v50  ;;  %v1358_v47 = vmul.f32 %v2319_v23, %v3796_v35  ;;  %v3800_v16 = vld [vmem:[#allocation29_spill] sm:$0xff]  ;;  %v1450_v50 = vmul.f32 %v3441_v62, %v1434_v10  ;;  %p2429_p1 = scmp.ne.s32.totalorder %s3615_s28, %s2428_s7  ;;  %p2436_p9 = scmp.lt.s32.totalorder %s2434_s13, %s2428_s7 }
 0x1de   : > { %v2323_v0 = vpop.eup %2322  ;;  %1468 = vst [vmem:[%s3461_s20] sm:$0xff] %v1452_v4  ;;  %2340 = vtanh.f32 %v1452_v4  ;;  %v1455_v14 = vadd.f32 %v3444_v32, %v1407_v37  ;;  %v1415_v33 = vadd.f32 %v1399_v45, %v1367_v7  ;;  %v1366_v55 = vmul.f32 %v2321_v42, %v3350_v59  ;;  %v3803_v37 = vld [vmem:[#allocation39_spill] sm:$0xff] }
 0x1df   : > { %v2325_v54 = vpop.eup %2324  ;;  %1476 = vst [vmem:[%s3461_s20 + $0x40] sm:$0xff] %v1460_v19  ;;  %2342 = vtanh.f32 %v1460_v19  ;;  %v1406_v61 = vadd.f32 %v3435_v58, %v1358_v47  ;;  %v1361_v30 = vmul.f32 %v2323_v0, %v3797_v20  ;;  %v1403_v59 = vmul.f32 %v3501_v31, %v1387_v56  ;;  %v3805_v0 = vld [vmem:[#allocation41_spill] sm:$0xff]  ;;  %p2430_p10 = pnand %p2429_p1, %p3806_p12  ;;  %p2437_p11 = por %p2436_p9, %p2435_p7 }
 0x1e0   : > { %v2327_v27 = vpop.eup %2326  ;;  %1471 = vst [vmem:[%s3461_s20 + $0x18] sm:$0xff] %v1455_v14  ;;  %2344 = vtanh.f32 %v1455_v14  ;;  %v1463_v60 = vadd.f32 %v1447_v53, %v1415_v33  ;;  %v1414_v22 = vadd.f32 %v1398_v41, %v1366_v55  ;;  %v1369_v32 = vmul.f32 %v2325_v54, %v3399_v1 }
 0x1e1   : > { %v2329_v45 = vpop.eup %2328  ;;  %v1454_v46 = vadd.f32 %v3426_v26, %v1406_v61  ;;  %v1409_v18 = vadd.f32 %v3472_v51, %v1361_v30  ;;  %v1360_v58 = vmul.f32 %v2327_v27, %v3798_v25  ;;  %v3799_v51 = vld [vmem:[#allocation37_spill] sm:$0xff]  ;;  %p2431_p5 = pneg %p2430_p10 }
 0x1e2   : > { %v2331_v63 = vpop.eup %2330  ;;  %1479 = vst [vmem:[%s3461_s20 + $0x58] sm:$0xff] %v1463_v60  ;;  %2346 = vtanh.f32 %v1463_v60  ;;  %v1462_v3 = vadd.f32 %v3525_v17, %v1414_v22  ;;  %v1417_v53 = vadd.f32 %v1401_v9, %v1369_v32  ;;  %v1368_v1 = vmul.f32 %v2329_v45, %v3382_v15 }
 0x1e3   : > { %v2333_v41 = vpop.eup %2332  ;;  %1470 = vst [vmem:[%s3461_s20 + $0x10] sm:$0xff] %v1454_v46  ;;  %2348 = vtanh.f32 %v1454_v46  ;;  %v1457_v31 = vadd.f32 %v3469_v57, %v1409_v18  ;;  %v1408_v26 = vadd.f32 %v3458_v2, %v1360_v58  ;;  %v1363_v11 = vmul.f32 %v2331_v63, %v3799_v51  ;;  %p2438_p3 = pnand %p2437_p11, %p2431_p5 }
 0x1e4   : > { %v2335_v49 = vpop.eup %2334  ;;  %1478 = vst [vmem:[%s3461_s20 + $0x50] sm:$0xff] %v1462_v3  ;;  %2350 = vtanh.f32 %v1462_v3  ;;  %v1465_v17 = vadd.f32 %v3543_v8, %v1417_v53  ;;  %v1416_v15 = vadd.f32 %v3538_v28, %v1368_v1  ;;  %v1371_v52 = vmul.f32 %v2333_v41, %v3478_v29 }
 0x1e5   : > { %v2337_v38 = vpop.eup %2336  ;;  %1473 = vst [vmem:[%s3461_s20 + $0x28] sm:$0xff] %v1457_v31  ;;  %2352 = vtanh.f32 %v1457_v31  ;;  %v1456_v2 = vadd.f32 %v3455_v40, %v1408_v26  ;;  %v1411_v57 = vadd.f32 %v3516_v39, %v1363_v11  ;;  %v1362_v48 = vmul.f32 %v2335_v49, %v3800_v16 }
 0x1e6   : > { %1481 = vst [vmem:[%s3461_s20 + $0x68] sm:$0xff] %v1465_v17  ;;  %2354 = vtanh.f32 %v1465_v17  ;;  %v1464_v34 = vadd.f32 %v3534_v5, %v1416_v15  ;;  %v1419_v8 = vadd.f32 %v1403_v59, %v1371_v52  ;;  %v1370_v28 = vmul.f32 %v2337_v38, %v3432_v24 }
 0x1e7   : > { %v2339_v29 = vpop.eup %2338  ;;  %1472 = vst [vmem:[%s3461_s20 + $0x20] sm:$0xff] %v1456_v2  ;;  %2356 = vtanh.f32 %v1456_v2  ;;  %v1459_v40 = vadd.f32 %v3507_v6, %v1411_v57  ;;  %v1410_v39 = vadd.f32 %v3504_v13, %v1362_v48  ;;  %v3802_v6 = vld [vmem:[#allocation23_spill] sm:$0xff] }
 0x1e8   : > { %v2341_v23 = vpop.eup %2340  ;;  %v1509_v5 = vmul.f32 %v2339_v29, %v3346_v21  ;;  %1480 = vst [vmem:[%s3461_s20 + $0x60] sm:$0xff] %v1464_v34  ;;  %2358 = vtanh.f32 %v1464_v34  ;;  %v1467_v24 = vadd.f32 %v1451_v43, %v1419_v8  ;;  %v1418_v9 = vadd.f32 %v3555_v36, %v1370_v28  ;;  %v3804_v36 = vld [vmem:[#allocation20_spill] sm:$0xff] }
 0x1e9   : > { %v2343_v62 = vpop.eup %2342  ;;  %v1500_v4 = vmul.f32 %v2341_v23, %v3801_v44  ;;  %1475 = vst [vmem:[%s3461_s20 + $0x38] sm:$0xff] %v1459_v40  ;;  %2360 = vtanh.f32 %v1459_v40  ;;  %v1458_v13 = vadd.f32 %v3802_v6, %v1410_v39 }
 0x1ea   : > { %v2345_v21 = vpop.eup %2344  ;;  %1525 = vst [vmem:[%s3558_s26 + $0x48] sm:$0xff] %v1509_v5  ;;  %v1508_v7 = vmul.f32 %v2343_v62, %v3803_v37  ;;  %1483 = vst [vmem:[%s3461_s20 + $0x78] sm:$0xff] %v1467_v24  ;;  %2362 = vtanh.f32 %v1467_v24  ;;  %v1466_v42 = vadd.f32 %v1450_v50, %v1418_v9 }
 0x1eb   : > { %1516 = vst [vmem:[%s3558_s26] sm:$0xff] %v1500_v4  ;;  %v1503_v19 = vmul.f32 %v2345_v21, %v3804_v36  ;;  %1474 = vst [vmem:[%s3461_s20 + $0x30] sm:$0xff] %v1458_v13  ;;  %2364 = vtanh.f32 %v1458_v13 }
 0x1ec   : > { %v2347_v35 = vpop.eup %2346  ;;  %1524 = vst [vmem:[%s3558_s26 + $0x40] sm:$0xff] %v1508_v7  ;;  %1482 = vst [vmem:[%s3461_s20 + $0x70] sm:$0xff] %v1466_v42  ;;  %2366 = vtanh.f32 %v1466_v42 }
 0x1ed   : > { %v2349_v47 = vpop.eup %2348  ;;  %1519 = vst [vmem:[%s3558_s26 + $0x18] sm:$0xff] %v1503_v19  ;;  %v1511_v56 = vmul.f32 %v2347_v35, %v3805_v0 }
 0x1ee   : > { %2441 = shalt.err (!%p2438_p3)
}
 0x1ef   : > { %s2442_s14 = scalar_lea.hbm %s3613_s19, 2048  ;;  %s2446_s20 = scalar_lea.hbm %s3735_s5, 4096 }
 0x1f0   : > { %p2443_p8 = scmp.ne.s32.totalorder %s3613_s19, %s2442_s14  ;;  %p2447_p4 = scmp.lt.u32.totalorder %s3613_s19, %s3735_s5 }
 0x1f1   : > { %p2448_p6 = scmp.lt.u32.totalorder %s2446_s20, %s2442_s14  ;;  %p2450_p1 = scmp.lt.u32.totalorder %s2442_s14, %s3613_s19 }
 0x1f2   : > { %p2444_p0 = pnand %p2443_p8, %p3806_p12 }
 0x1f3   : > { %p2449_p13 = por %p2448_p6, %p2447_p4 }
 0x1f4   : > { %p2445_p2 = pneg %p2444_p0 }
 0x1f5   : > { %p2451_p10 = por %p2450_p1, %p2449_p13 }
 0x1f7   : > { %p2452_p5 = pnand %p2451_p10, %p2445_p2 }
 0x1f9   : > { %2455 = shalt.err (!%p2452_p5)
}
 0x1fa   : > { %s2538_s7 = smov 128   ;;  %s2539_s29 = smov 8   ;;  %v2351_v14 = vpop.eup %2350  ;;  %v3807_v33 = vld [vmem:[#allocation18_spill] sm:$0xff]  ;;  %1527 = vst [vmem:[%s3558_s26 + $0x58] sm:$0xff] %v1511_v56  ;;  %v3808_v43 = vld [vmem:[#allocation40_spill] sm:$0xff]  ;;  %v3810_v22 = vld [vmem:[#allocation43_spill] sm:$0xff] }
 0x1fb   : > { %1991 = dma.vmem_to_hbm [thread:$0]  (%p3806_p12), %s3615_s28, 2048, %s3613_s19, %s1533_s1, %s2538_s7, %s2538_s7, %s2539_s29   ;;  %v1502_v55 = vmul.f32 %v2349_v47, %v3807_v33  ;;  %v2353_v54 = vpop.eup %2352  ;;  %v1510_v61 = vmul.f32 %v2351_v14, %v3808_v43  ;;  %v3809_v30 = vld [vmem:[#allocation28_spill] sm:$0xff]  ;;  %v3812_v25 = vld [vmem:[#allocation42_spill] sm:$0xff] }
 0x1fc   : > { %v2355_v20 = vpop.eup %2354  ;;  %v1505_v27 = vmul.f32 %v2353_v54, %v3809_v30  ;;  %v3811_v59 = vld [vmem:[#allocation24_spill] sm:$0xff]  ;;  %v3813_v3 = vld [vmem:[#allocation38_spill] sm:$0xff]  ;;  %s1567_s28 = sshll.u32 %s3558_s26, 4  ;;  %s3677_s16 = scalar_lea.hbm %s3736_s6, %s1845_s12  ;;  %s3681_s28 = int_to_ptr.vmem [resolvable:$true] %s1567_s28 }
 0x1fd   : > { %1518 = vst [vmem:[%s3558_s26 + $0x10] sm:$0xff] %v1502_v55  ;;  %v2357_v60 = vpop.eup %2356  ;;  %1526 = vst [vmem:[%s3558_s26 + $0x50] sm:$0xff] %v1510_v61  ;;  %v1513_v32 = vmul.f32 %v2355_v20, %v3810_v22  ;;  %v3814_v26 = vld [vmem:[#allocation36_spill] sm:$0xff]  ;;  %v3815_v11 = vld [vmem:[#allocation22_spill] sm:$0xff]  ;;  %s1538_s13 = scalar_lea.sflag [#allocation9], %s2736_s17  ;;  %s2456_s14 = scalar_lea.vmem %s3681_s28, 2048 }
 0x1fe   : > { %v2359_v45 = vpop.eup %2358  ;;  %1521 = vst [vmem:[%s3558_s26 + $0x28] sm:$0xff] %v1505_v27  ;;  %v1504_v46 = vmul.f32 %v2357_v60, %v3811_v59  ;;  %p2457_p7 = scmp.ne.s32.totalorder %s3681_s28, %s2456_s14  ;;  %s2540_s25 = smov [#allocation8]  }
 0x1ff   : > { %v2361_v18 = vpop.eup %2360  ;;  %1529 = vst [vmem:[%s3558_s26 + $0x68] sm:$0xff] %v1513_v32  ;;  %v1512_v58 = vmul.f32 %v2359_v45, %v3812_v25  ;;  %s2460_s15 = sshll.u32 %s2540_s25, 4  ;;  %s2461_s15 = int_to_ptr.vmem [resolvable:$false] %s2460_s15 }
 0x200   : > { %v2363_v63 = vpop.eup %2362  ;;  %1520 = vst [vmem:[%s3558_s26 + $0x20] sm:$0xff] %v1504_v46  ;;  %v1507_v53 = vmul.f32 %v2361_v18, %v3813_v3  ;;  %p2458_p9 = pnand %p2457_p7, %p3806_p12  ;;  %s2462_s12 = scalar_lea.vmem %s2461_s15, 4096 }
 0x201   : > { %v2365_v1 = vpop.eup %2364  ;;  %1528 = vst [vmem:[%s3558_s26 + $0x60] sm:$0xff] %v1512_v58  ;;  %v1515_v41 = vmul.f32 %v2363_v63, %v3513_v12  ;;  %p2463_p3 = scmp.lt.s32.totalorder %s3681_s28, %s2461_s15  ;;  %p2464_p8 = scmp.lt.s32.totalorder %s2462_s12, %s2456_s14 }
 0x202   : > { %v2367_v31 = vpop.eup %2366  ;;  %1523 = vst [vmem:[%s3558_s26 + $0x38] sm:$0xff] %v1507_v53  ;;  %v1506_v51 = vmul.f32 %v2365_v1, %v3814_v26  ;;  %p2459_p11 = pneg %p2458_p9 }
 0x203   : > { %1531 = vst [vmem:[%s3558_s26 + $0x78] sm:$0xff] %v1515_v41  ;;  %v1514_v49 = vmul.f32 %v2367_v31, %v3815_v11  ;;  %p2465_p0 = por %p2464_p8, %p2463_p3 }
 0x204   : > { %1522 = vst [vmem:[%s3558_s26 + $0x30] sm:$0xff] %v1506_v51 }
 0x205   : > { %1530 = vst [vmem:[%s3558_s26 + $0x70] sm:$0xff] %v1514_v49  ;;  %p2466_p2 = pnand %p2465_p0, %p2459_p11 }
 0x207   : > { %2469 = shalt.err (!%p2466_p2)
}
 0x208   : > { %s2470_s26 = scalar_lea.hbm %s3677_s16, 2048  ;;  %s2474_s11 = scalar_lea.hbm %s3736_s6, 4096 }
 0x209   : > { %p2471_p4 = scmp.ne.s32.totalorder %s3677_s16, %s2470_s26  ;;  %p2475_p1 = scmp.lt.u32.totalorder %s3677_s16, %s3736_s6 }
 0x20a   : > { %p2476_p10 = scmp.lt.u32.totalorder %s2474_s11, %s2470_s26  ;;  %p2478_p7 = scmp.lt.u32.totalorder %s2470_s26, %s3677_s16 }
 0x20b   : > { %p2472_p6 = pnand %p2471_p4, %p3806_p12 }
 0x20c   : > { %p2477_p5 = por %p2476_p10, %p2475_p1 }
 0x20d   : > { %p2473_p13 = pneg %p2472_p6 }
 0x20e   : > { %p2479_p9 = por %p2478_p7, %p2477_p5 }
 0x210   : > { %p2480_p11 = pnand %p2479_p9, %p2473_p13 }
 0x212   : > { %2483 = shalt.err (!%p2480_p11)
}
 0x213   : > { %1992 = dma.vmem_to_hbm [thread:$0]  (%p3806_p12), %s3681_s28, 2048, %s3677_s16, %s1538_s13, %s2538_s7, %s2538_s7, %s2539_s29  }
 0x214 PF: > { %s1582_s1 = sand.u32 1, %s2518_s21   ;;  %p3816_p3 = scmp.ne.s32.totalorder %s3744_s10, 0 }
 0x215   : > { %p3817_p8 = scmp.ge.s32.totalorder %s2530_s24, 2  ;;  %s1583_s14 = scalar_lea.sflag [#allocation4], %s1582_s1 }
 0x217   : > { %p2003_p0 = pnand %p3817_p8, %p3816_p3 }
 0x219   : > { %2509 = dma.done.wait (!%p2003_p0), %s1583_s14, 2048  }
 0x21a   : > { %2511 = vsyncadd (!%p2003_p0), %s1583_s14, 4294965248  ;;  %s1592_s9 = scalar_lea.sflag [#allocation9], %s1582_s1 }
 0x21b   : > { %2513 = dma.done.wait (!%p2003_p0), %s1592_s9, 2048  }
 0x21c   : > { %2515 = vsyncadd (!%p2003_p0), %s1592_s9, 4294965248  ;;  %p26_p12 = scmp.ge.s32.totalorder %s2601_s27, 4   ;;  %s3818_s21 = smov %s2522_s22 }
 0x21d   : > { %s3819_s22 = smov %s2526_s23  ;;  %s3820_s23 = smov %s2613_s30 }
 0x21e   : > { %s3821_s24 = smov %s2601_s27  ;;  %28 = sbr.rel (!%p26_p12) target bundleno = 11 (0xb), region = 118 }
 0x225   :  { %1597 = vsyncpa [#allocation3], 1 }
 0x226   :  { %1599 = vsyncpa [#allocation3 + $0x1], 1 }
 0x227   :  { %1600 = vsyncpa [#allocation6], 1 }
 0x228   :  { %1602 = vsyncpa [#allocation6 + $0x1], 1 }
 0x229   :  { %1603 = vsyncpa [#allocation4], 1 }
 0x22a   :  { %1605 = vsyncpa [#allocation4 + $0x1], 1 }
 0x22b   :  { %1606 = vsyncpa [#allocation9], 1 }
 0x22c   :  { %1608 = vsyncpa [#allocation9 + $0x1], 1 }

</bundles_post_ra>
